<compile_context>
chip_gen: v7x
topology: tpu7x:2x2x1
jax: 0.10.0
libtpu: 0.0.40
codegen_flags: <defaults>
</compile_context>

<pallas_src>
import functools

import jax
import jax.numpy as jnp
from jax.experimental import pallas as pl
from jax.experimental.pallas import tpu as pltpu


# ------------------------------------------------------------------
# Pallas kernel: LSTM (proj_size) recurrence over a chunk of timesteps
# ------------------------------------------------------------------
def lstm_recurrence_kernel(g_ref, whh_ref, whr_ref, o_ref, h_sc, c_sc,
                           *, t_chunk, num_chunks, seq_len, n_ahead):
    """Runs t_chunk LSTM steps of the projected recurrence.

    g_ref   : (4, t_chunk, N, H)  precomputed per-gate input pre-activations
                                  (BatchNorm affine + b_ih + b_hh folded in)
    whh_ref : (4, P, H)           per-gate W_hh^T
    whr_ref : (H, P)              W_hr^T (proj_size projection)
    o_ref   : (n_ahead, N, P)     only the last n_ahead hidden states
    h_sc    : (N, P) VMEM scratch h carry across grid steps
    c_sc    : (N, H) VMEM scratch c carry across grid steps
    """
    chunk = pl.program_id(0)

    @pl.when(chunk == 0)
    def _init():
        h_sc[...] = jnp.zeros_like(h_sc)
        c_sc[...] = jnp.zeros_like(c_sc)

    h = h_sc[...]
    c = c_sc[...]

    # Constant weights: load once per grid step, reuse across the unrolled loop.
    whh = [whh_ref[k] for k in range(4)]          # each (P, H)
    whr = whr_ref[...]                            # (H, P)
    first_out = seq_len - n_ahead

    # Fully unrolled inner time loop (static trip count): every ref index is
    # static, and the scheduler sees the whole chunk.
    for tl in range(t_chunk):
        pre_i = g_ref[0, tl] + jnp.dot(h, whh[0], preferred_element_type=jnp.float32)
        pre_f = g_ref[1, tl] + jnp.dot(h, whh[1], preferred_element_type=jnp.float32)
        pre_g = g_ref[2, tl] + jnp.dot(h, whh[2], preferred_element_type=jnp.float32)
        pre_o = g_ref[3, tl] + jnp.dot(h, whh[3], preferred_element_type=jnp.float32)

        i_t = jax.nn.sigmoid(pre_i)
        f_t = jax.nn.sigmoid(pre_f)
        g_t = jnp.tanh(pre_g)
        o_t = jax.nn.sigmoid(pre_o)

        c = f_t * c + i_t * g_t
        h = jnp.dot(o_t * jnp.tanh(c), whr, preferred_element_type=jnp.float32)

        # Only the last n_ahead global timesteps are emitted.
        if num_chunks == 1:
            t_glob = tl                           # static guard + static store
        else:
            t_glob = chunk * t_chunk + tl         # traced guard + dynamic store

        @pl.when(t_glob >= first_out)
        def _store(h=h, t_glob=t_glob):
            idx = t_glob - first_out
            if not isinstance(idx, int):
                idx = jnp.maximum(idx, 0)
            o_ref[idx] = h.astype(o_ref.dtype)

    h_sc[...] = h
    c_sc[...] = c


# ------------------------------------------------------------------
# Module forward: BN folding + hoisted input projection + Pallas recurrence
# ------------------------------------------------------------------
def lstm_module_forward(x, params, n_ahead, output_size, t_chunk=None):
    """x: (N, L, H_in). Returns (N, n_ahead, output_size)."""
    N, L, Hin = x.shape
    H4 = params["w_ih"].shape[0]
    H = H4 // 4
    P = params["w_hr"].shape[0]
    assert 1 <= n_ahead <= L

    if t_chunk is None:
        # Collapse the time grid entirely for short sequences; otherwise chunk.
        t_chunk = L if L <= 64 else next(tc for tc in range(64, 0, -1) if L % tc == 0)
    assert L % t_chunk == 0
    num_chunks = L // t_chunk

    f32 = jnp.float32
    x = x.astype(f32)

    # ---- BatchNorm1d (training-mode batch stats) folded into W_ih / bias ----
    x2d = x.reshape(N * L, Hin)
    mean = jnp.mean(x2d, axis=0)
    var = jnp.mean((x2d - mean) ** 2, axis=0)                 # biased variance
    scale = params["bn_gamma"].astype(f32) * jax.lax.rsqrt(var + 1e-5)
    shift = params["bn_beta"].astype(f32) - mean * scale

    w_ih = params["w_ih"].astype(f32)                         # (4H, Hin)
    w_ih_eff = w_ih * scale[None, :]
    b_eff = (params["b_ih"].astype(f32) + params["b_hh"].astype(f32)
             + w_ih @ shift)                                  # (4H,)

    # ---- Hoisted input projection for ALL timesteps, per-gate & time-major --
    # One big contraction instead of L tiny per-step (N x Hin) matmuls.
    w_ih_g = w_ih_eff.reshape(4, H, Hin)                      # PyTorch order i,f,g,o
    b_g = b_eff.reshape(4, H)
    gates = (jnp.einsum("nlc,khc->klnh", x, w_ih_g)
             + b_g[:, None, None, :]).astype(f32)             # (4, L, N, H)

    w_hh_gT = jnp.transpose(params["w_hh"].astype(f32).reshape(4, H, P),
                            (0, 2, 1))                        # (4, P, H)
    w_hr_T = params["w_hr"].astype(f32).T                     # (H, P)

    kernel = functools.partial(lstm_recurrence_kernel, t_chunk=t_chunk,
                               num_chunks=num_chunks, seq_len=L,
                               n_ahead=n_ahead)

    out_tnp = pl.pallas_call(
        kernel,
        out_shape=jax.ShapeDtypeStruct((n_ahead, N, P), x.dtype),
        grid_spec=pltpu.PrefetchScalarGridSpec(
            num_scalar_prefetch=0,
            grid=(num_chunks,),
            in_specs=[
                # precomputed gates: stream one time-chunk per grid step
                pl.BlockSpec((4, t_chunk, N, H), lambda c: (0, c, 0, 0)),
                # constant-index weights (Pallas skips re-fetch across steps);
                # at production sizes add pipeline_mode=pl.Buffered(1) here to
                # drop the unused second VMEM buffer.
                pl.BlockSpec((4, P, H), lambda c: (0, 0, 0)),
                pl.BlockSpec((H, P), lambda c: (0, 0)),
            ],
            # Resident output block holding only the last n_ahead steps.
            out_specs=pl.BlockSpec((n_ahead, N, P), lambda c: (0, 0, 0)),
            scratch_shapes=[
                pltpu.VMEM((N, P), f32),                      # h carry
                pltpu.VMEM((N, H), f32),                      # c carry
            ],
        ),
        # The recurrence is inherently sequential in time.
        compiler_params=pltpu.CompilerParams(
            dimension_semantics=("arbitrary",)),
    )(gates, w_hh_gT, w_hr_T)

    out = jnp.transpose(out_tnp, (1, 0, 2))                   # (N, n_ahead, P)
    return out[:, :, :output_size]                            # proj_size == output_size


# ------------------------------------------------------------------
# Pure-JAX reference for correctness check
# ------------------------------------------------------------------
def reference_forward(x, params, n_ahead, output_size):
    N, L, Hin = x.shape
    x2d = x.reshape(-1, Hin)
    mean = jnp.mean(x2d, axis=0, keepdims=True)
    var = jnp.mean((x2d - mean) ** 2, axis=0, keepdims=True)
    x2d = (x2d - mean) / jnp.sqrt(var + 1e-5) * params["bn_gamma"] + params["bn_beta"]
    x = x2d.reshape(N, L, Hin)

    H = params["w_hh"].shape[0] // 4
    P = params["w_hr"].shape[0]

    def step(carry, x_t):
        h, c = carry
        gates = (x_t @ params["w_ih"].T + h @ params["w_hh"].T
                 + params["b_ih"] + params["b_hh"])
        i = jax.nn.sigmoid(gates[:, :H])
        f = jax.nn.sigmoid(gates[:, H:2 * H])
        g = jnp.tanh(gates[:, 2 * H:3 * H])
        o = jax.nn.sigmoid(gates[:, 3 * H:])
        c = f * c + i * g
        h = (o * jnp.tanh(c)) @ params["w_hr"].T
        return (h, c), h

    h0 = jnp.zeros((N, P), jnp.float32)
    c0 = jnp.zeros((N, H), jnp.float32)
    _, ys = jax.lax.scan(step, (h0, c0), jnp.transpose(x, (1, 0, 2)))
    out = jnp.transpose(ys, (1, 0, 2))
    return out[:, -n_ahead:, :output_size]


# ------------------------------------------------------------------
# Deterministic parameter init (PyTorch-style uniform(-k, k), k=1/sqrt(H))
# ------------------------------------------------------------------
def init_params(key, input_size, hidden_size, output_size):
    k = 1.0 / jnp.sqrt(jnp.float32(hidden_size))
    ks = jax.random.split(key, 5)
    u = lambda kk, shape: jax.random.uniform(kk, shape, jnp.float32, -k, k)
    return {
        # BatchNorm1d defaults: gamma=1, beta=0
        "bn_gamma": jnp.ones((input_size,), jnp.float32),
        "bn_beta": jnp.zeros((input_size,), jnp.float32),
        # LSTM with proj_size=output_size
        "w_ih": u(ks[0], (4 * hidden_size, input_size)),
        "w_hh": u(ks[1], (4 * hidden_size, output_size)),
        "b_ih": u(ks[2], (4 * hidden_size,)),
        "b_hh": u(ks[3], (4 * hidden_size,)),
        "w_hr": u(ks[4], (output_size, hidden_size)),
    }


if __name__ == "__main__":
    N, L = 2, 8
    input_size, hidden_size, output_size, n_ahead = 16, 32, 8, 1

    key = jax.random.PRNGKey(0)
    k_x, k_p = jax.random.split(key)
    x = jax.random.normal(k_x, (N, L, input_size), jnp.float32)
    params = init_params(k_p, input_size, hidden_size, output_size)

    out = lstm_module_forward(x, params, n_ahead, output_size)
    out = jax.block_until_ready(out)

    ref = jax.block_until_ready(reference_forward(x, params, n_ahead, output_size))
    assert out.shape == (N, n_ahead, output_size), out.shape
    assert jnp.allclose(out, ref, atol=2e-3, rtol=2e-3), \
        f"max abs err {jnp.max(jnp.abs(out - ref))}"

    print("KERNEL_OK")
</pallas_src>

<mosaic_0001>
module attributes {stable_mosaic.version = 11 : i64} {
  func.func @lstm_recurrence_kernel(%arg0: i32, %arg1: memref<4x8x2x32xf32, #tpu.memory_space<vmem>>, %arg2: memref<4x8x32xf32, #tpu.memory_space<vmem>>, %arg3: memref<32x8xf32, #tpu.memory_space<vmem>>, %arg4: memref<1x2x8xf32, #tpu.memory_space<vmem>>, %arg5: memref<2x8xf32, #tpu.memory_space<vmem>>, %arg6: memref<2x32xf32, #tpu.memory_space<vmem>>) attributes {dimension_semantics = [#tpu.dimension_semantics<arbitrary>], iteration_bounds = array<i64: 1>, scalar_prefetch = 0 : i64, scratch_operands = 2 : i64, tpu.core_type = #tpu.core_type<tc>, window_params = [{transform_indices = @transform_0, window_bounds = array<i64: 4, 8, 2, 32>}, {pipeline_mode = #tpu.pipeline_mode<synchronous>, transform_indices = @transform_1, window_bounds = array<i64: 4, 8, 32>}, {pipeline_mode = #tpu.pipeline_mode<synchronous>, transform_indices = @transform_2, window_bounds = array<i64: 32, 8>}, {pipeline_mode = #tpu.pipeline_mode<synchronous>, transform_indices = @transform_3, window_bounds = array<i64: 1, 2, 8>}]} {
    %c0_i32 = arith.constant 0 : i32
    %0 = arith.cmpi eq, %arg0, %c0_i32 : i32
    %1 = arith.extui %0 : i1 to i32
    %c0_i32_0 = arith.constant 0 : i32
    %2 = arith.cmpi ne, %1, %c0_i32_0 : i32
    scf.if %2 {
      %cst_209 = arith.constant 0.000000e+00 : f32
      %323 = vector.broadcast %cst_209 : f32 to vector<2x8xf32>
      %c0_210 = arith.constant 0 : index
      %c0_211 = arith.constant 0 : index
      %324 = vector.load %arg5[%c0_210, %c0_211] : memref<2x8xf32, #tpu.memory_space<vmem>>, vector<2x8xf32>
      tpu.vector_store %arg5[%c0_210, %c0_211], %323 {strides = array<i32>} : memref<2x8xf32, #tpu.memory_space<vmem>>, vector<2x8xf32>,
      %cst_212 = arith.constant 0.000000e+00 : f32
      %325 = vector.broadcast %cst_212 : f32 to vector<2x32xf32>
      %c0_213 = arith.constant 0 : index
      %c0_214 = arith.constant 0 : index
      %326 = vector.load %arg6[%c0_213, %c0_214] : memref<2x32xf32, #tpu.memory_space<vmem>>, vector<2x32xf32>
      tpu.vector_store %arg6[%c0_213, %c0_214], %325 {strides = array<i32>} : memref<2x32xf32, #tpu.memory_space<vmem>>, vector<2x32xf32>,
    } else {
    }
    %c0 = arith.constant 0 : index
    %c0_1 = arith.constant 0 : index
    %3 = vector.load %arg5[%c0, %c0_1] : memref<2x8xf32, #tpu.memory_space<vmem>>, vector<2x8xf32>
    %c0_2 = arith.constant 0 : index
    %c0_3 = arith.constant 0 : index
    %4 = vector.load %arg6[%c0_2, %c0_3] : memref<2x32xf32, #tpu.memory_space<vmem>>, vector<2x32xf32>
    %c0_4 = arith.constant 0 : index
    %c0_5 = arith.constant 0 : index
    %c0_6 = arith.constant 0 : index
    %5 = vector.load %arg2[%c0_4, %c0_5, %c0_6] : memref<4x8x32xf32, #tpu.memory_space<vmem>>, vector<1x8x32xf32>
    %6 = vector.shape_cast %5 : vector<1x8x32xf32> to vector<8x32xf32>
    %c1 = arith.constant 1 : index
    %c0_7 = arith.constant 0 : index
    %c0_8 = arith.constant 0 : index
    %7 = vector.load %arg2[%c1, %c0_7, %c0_8] : memref<4x8x32xf32, #tpu.memory_space<vmem>>, vector<1x8x32xf32>
    %8 = vector.shape_cast %7 : vector<1x8x32xf32> to vector<8x32xf32>
    %c2 = arith.constant 2 : index
    %c0_9 = arith.constant 0 : index
    %c0_10 = arith.constant 0 : index
    %9 = vector.load %arg2[%c2, %c0_9, %c0_10] : memref<4x8x32xf32, #tpu.memory_space<vmem>>, vector<1x8x32xf32>
    %10 = vector.shape_cast %9 : vector<1x8x32xf32> to vector<8x32xf32>
    %c3 = arith.constant 3 : index
    %c0_11 = arith.constant 0 : index
    %c0_12 = arith.constant 0 : index
    %11 = vector.load %arg2[%c3, %c0_11, %c0_12] : memref<4x8x32xf32, #tpu.memory_space<vmem>>, vector<1x8x32xf32>
    %12 = vector.shape_cast %11 : vector<1x8x32xf32> to vector<8x32xf32>
    %c0_13 = arith.constant 0 : index
    %c0_14 = arith.constant 0 : index
    %13 = vector.load %arg3[%c0_13, %c0_14] : memref<32x8xf32, #tpu.memory_space<vmem>>, vector<32x8xf32>
    %c0_15 = arith.constant 0 : index
    %c0_16 = arith.constant 0 : index
    %c0_17 = arith.constant 0 : index
    %c0_18 = arith.constant 0 : index
    %14 = vector.load %arg1[%c0_15, %c0_16, %c0_17, %c0_18] : memref<4x8x2x32xf32, #tpu.memory_space<vmem>>, vector<1x1x2x32xf32>
    %15 = vector.shape_cast %14 : vector<1x1x2x32xf32> to vector<2x32xf32>
    %cst = arith.constant dense<0.000000e+00> : vector<2x32xf32>
    %16 = tpu.matmul %3, %6, %cst {dimension_numbers = #tpu.dot_dimension_numbers<[1], [0], [0], [1], [0, 0, 1, 1], [], []>} : vector<2x8xf32>, vector<8x32xf32>, vector<2x32xf32> -> vector<2x32xf32>
    %17 = arith.addf %15, %16 : vector<2x32xf32>
    %c1_19 = arith.constant 1 : index
    %c0_20 = arith.constant 0 : index
    %c0_21 = arith.constant 0 : index
    %c0_22 = arith.constant 0 : index
    %18 = vector.load %arg1[%c1_19, %c0_20, %c0_21, %c0_22] : memref<4x8x2x32xf32, #tpu.memory_space<vmem>>, vector<1x1x2x32xf32>
    %19 = vector.shape_cast %18 : vector<1x1x2x32xf32> to vector<2x32xf32>
    %cst_23 = arith.constant dense<0.000000e+00> : vector<2x32xf32>
    %20 = tpu.matmul %3, %8, %cst_23 {dimension_numbers = #tpu.dot_dimension_numbers<[1], [0], [0], [1], [0, 0, 1, 1], [], []>} : vector<2x8xf32>, vector<8x32xf32>, vector<2x32xf32> -> vector<2x32xf32>
    %21 = arith.addf %19, %20 : vector<2x32xf32>
    %c2_24 = arith.constant 2 : index
    %c0_25 = arith.constant 0 : index
    %c0_26 = arith.constant 0 : index
    %c0_27 = arith.constant 0 : index
    %22 = vector.load %arg1[%c2_24, %c0_25, %c0_26, %c0_27] : memref<4x8x2x32xf32, #tpu.memory_space<vmem>>, vector<1x1x2x32xf32>
    %23 = vector.shape_cast %22 : vector<1x1x2x32xf32> to vector<2x32xf32>
    %cst_28 = arith.constant dense<0.000000e+00> : vector<2x32xf32>
    %24 = tpu.matmul %3, %10, %cst_28 {dimension_numbers = #tpu.dot_dimension_numbers<[1], [0], [0], [1], [0, 0, 1, 1], [], []>} : vector<2x8xf32>, vector<8x32xf32>, vector<2x32xf32> -> vector<2x32xf32>
    %25 = arith.addf %23, %24 : vector<2x32xf32>
    %c3_29 = arith.constant 3 : index
    %c0_30 = arith.constant 0 : index
    %c0_31 = arith.constant 0 : index
    %c0_32 = arith.constant 0 : index
    %26 = vector.load %arg1[%c3_29, %c0_30, %c0_31, %c0_32] : memref<4x8x2x32xf32, #tpu.memory_space<vmem>>, vector<1x1x2x32xf32>
    %27 = vector.shape_cast %26 : vector<1x1x2x32xf32> to vector<2x32xf32>
    %cst_33 = arith.constant dense<0.000000e+00> : vector<2x32xf32>
    %28 = tpu.matmul %3, %12, %cst_33 {dimension_numbers = #tpu.dot_dimension_numbers<[1], [0], [0], [1], [0, 0, 1, 1], [], []>} : vector<2x8xf32>, vector<8x32xf32>, vector<2x32xf32> -> vector<2x32xf32>
    %29 = arith.addf %27, %28 : vector<2x32xf32>
    %30 = arith.negf %17 : vector<2x32xf32>
    %31 = math.exp %30 : vector<2x32xf32>
    %cst_34 = arith.constant 1.000000e+00 : f32
    %32 = vector.broadcast %cst_34 : f32 to vector<2x32xf32>
    %33 = arith.addf %32, %31 : vector<2x32xf32>
    %34 = arith.divf %32, %33 : vector<2x32xf32>
    %35 = arith.negf %21 : vector<2x32xf32>
    %36 = math.exp %35 : vector<2x32xf32>
    %cst_35 = arith.constant 1.000000e+00 : f32
    %37 = vector.broadcast %cst_35 : f32 to vector<2x32xf32>
    %38 = arith.addf %37, %36 : vector<2x32xf32>
    %39 = arith.divf %37, %38 : vector<2x32xf32>
    %40 = math.tanh %25 : vector<2x32xf32>
    %41 = arith.negf %29 : vector<2x32xf32>
    %42 = math.exp %41 : vector<2x32xf32>
    %cst_36 = arith.constant 1.000000e+00 : f32
    %43 = vector.broadcast %cst_36 : f32 to vector<2x32xf32>
    %44 = arith.addf %43, %42 : vector<2x32xf32>
    %45 = arith.divf %43, %44 : vector<2x32xf32>
    %46 = arith.mulf %39, %4 : vector<2x32xf32>
    %47 = arith.mulf %34, %40 : vector<2x32xf32>
    %48 = arith.addf %46, %47 : vector<2x32xf32>
    %49 = math.tanh %48 : vector<2x32xf32>
    %50 = arith.mulf %45, %49 : vector<2x32xf32>
    %cst_37 = arith.constant dense<0.000000e+00> : vector<2x8xf32>
    %51 = tpu.matmul %50, %13, %cst_37 {dimension_numbers = #tpu.dot_dimension_numbers<[1], [0], [0], [1], [0, 0, 1, 1], [], []>} : vector<2x32xf32>, vector<32x8xf32>, vector<2x8xf32> -> vector<2x8xf32>
    %c0_38 = arith.constant 0 : index
    %c1_39 = arith.constant 1 : index
    %c0_40 = arith.constant 0 : index
    %c0_41 = arith.constant 0 : index
    %52 = vector.load %arg1[%c0_38, %c1_39, %c0_40, %c0_41] : memref<4x8x2x32xf32, #tpu.memory_space<vmem>>, vector<1x1x2x32xf32>
    %53 = vector.shape_cast %52 : vector<1x1x2x32xf32> to vector<2x32xf32>
    %cst_42 = arith.constant dense<0.000000e+00> : vector<2x32xf32>
    %54 = tpu.matmul %51, %6, %cst_42 {dimension_numbers = #tpu.dot_dimension_numbers<[1], [0], [0], [1], [0, 0, 1, 1], [], []>} : vector<2x8xf32>, vector<8x32xf32>, vector<2x32xf32> -> vector<2x32xf32>
    %55 = arith.addf %53, %54 : vector<2x32xf32>
    %c1_43 = arith.constant 1 : index
    %c1_44 = arith.constant 1 : index
    %c0_45 = arith.constant 0 : index
    %c0_46 = arith.constant 0 : index
    %56 = vector.load %arg1[%c1_43, %c1_44, %c0_45, %c0_46] : memref<4x8x2x32xf32, #tpu.memory_space<vmem>>, vector<1x1x2x32xf32>
    %57 = vector.shape_cast %56 : vector<1x1x2x32xf32> to vector<2x32xf32>
    %cst_47 = arith.constant dense<0.000000e+00> : vector<2x32xf32>
    %58 = tpu.matmul %51, %8, %cst_47 {dimension_numbers = #tpu.dot_dimension_numbers<[1], [0], [0], [1], [0, 0, 1, 1], [], []>} : vector<2x8xf32>, vector<8x32xf32>, vector<2x32xf32> -> vector<2x32xf32>
    %59 = arith.addf %57, %58 : vector<2x32xf32>
    %c2_48 = arith.constant 2 : index
    %c1_49 = arith.constant 1 : index
    %c0_50 = arith.constant 0 : index
    %c0_51 = arith.constant 0 : index
    %60 = vector.load %arg1[%c2_48, %c1_49, %c0_50, %c0_51] : memref<4x8x2x32xf32, #tpu.memory_space<vmem>>, vector<1x1x2x32xf32>
    %61 = vector.shape_cast %60 : vector<1x1x2x32xf32> to vector<2x32xf32>
    %cst_52 = arith.constant dense<0.000000e+00> : vector<2x32xf32>
    %62 = tpu.matmul %51, %10, %cst_52 {dimension_numbers = #tpu.dot_dimension_numbers<[1], [0], [0], [1], [0, 0, 1, 1], [], []>} : vector<2x8xf32>, vector<8x32xf32>, vector<2x32xf32> -> vector<2x32xf32>
    %63 = arith.addf %61, %62 : vector<2x32xf32>
    %c3_53 = arith.constant 3 : index
    %c1_54 = arith.constant 1 : index
    %c0_55 = arith.constant 0 : index
    %c0_56 = arith.constant 0 : index
    %64 = vector.load %arg1[%c3_53, %c1_54, %c0_55, %c0_56] : memref<4x8x2x32xf32, #tpu.memory_space<vmem>>, vector<1x1x2x32xf32>
    %65 = vector.shape_cast %64 : vector<1x1x2x32xf32> to vector<2x32xf32>
    %cst_57 = arith.constant dense<0.000000e+00> : vector<2x32xf32>
    %66 = tpu.matmul %51, %12, %cst_57 {dimension_numbers = #tpu.dot_dimension_numbers<[1], [0], [0], [1], [0, 0, 1, 1], [], []>} : vector<2x8xf32>, vector<8x32xf32>, vector<2x32xf32> -> vector<2x32xf32>
    %67 = arith.addf %65, %66 : vector<2x32xf32>
    %68 = arith.negf %55 : vector<2x32xf32>
    %69 = math.exp %68 : vector<2x32xf32>
    %cst_58 = arith.constant 1.000000e+00 : f32
    %70 = vector.broadcast %cst_58 : f32 to vector<2x32xf32>
    %71 = arith.addf %70, %69 : vector<2x32xf32>
    %72 = arith.divf %70, %71 : vector<2x32xf32>
    %73 = arith.negf %59 : vector<2x32xf32>
    %74 = math.exp %73 : vector<2x32xf32>
    %cst_59 = arith.constant 1.000000e+00 : f32
    %75 = vector.broadcast %cst_59 : f32 to vector<2x32xf32>
    %76 = arith.addf %75, %74 : vector<2x32xf32>
    %77 = arith.divf %75, %76 : vector<2x32xf32>
    %78 = math.tanh %63 : vector<2x32xf32>
    %79 = arith.negf %67 : vector<2x32xf32>
    %80 = math.exp %79 : vector<2x32xf32>
    %cst_60 = arith.constant 1.000000e+00 : f32
    %81 = vector.broadcast %cst_60 : f32 to vector<2x32xf32>
    %82 = arith.addf %81, %80 : vector<2x32xf32>
    %83 = arith.divf %81, %82 : vector<2x32xf32>
    %84 = arith.mulf %77, %48 : vector<2x32xf32>
    %85 = arith.mulf %72, %78 : vector<2x32xf32>
    %86 = arith.addf %84, %85 : vector<2x32xf32>
    %87 = math.tanh %86 : vector<2x32xf32>
    %88 = arith.mulf %83, %87 : vector<2x32xf32>
    %cst_61 = arith.constant dense<0.000000e+00> : vector<2x8xf32>
    %89 = tpu.matmul %88, %13, %cst_61 {dimension_numbers = #tpu.dot_dimension_numbers<[1], [0], [0], [1], [0, 0, 1, 1], [], []>} : vector<2x32xf32>, vector<32x8xf32>, vector<2x8xf32> -> vector<2x8xf32>
    %c0_62 = arith.constant 0 : index
    %c2_63 = arith.constant 2 : index
    %c0_64 = arith.constant 0 : index
    %c0_65 = arith.constant 0 : index
    %90 = vector.load %arg1[%c0_62, %c2_63, %c0_64, %c0_65] : memref<4x8x2x32xf32, #tpu.memory_space<vmem>>, vector<1x1x2x32xf32>
    %91 = vector.shape_cast %90 : vector<1x1x2x32xf32> to vector<2x32xf32>
    %cst_66 = arith.constant dense<0.000000e+00> : vector<2x32xf32>
    %92 = tpu.matmul %89, %6, %cst_66 {dimension_numbers = #tpu.dot_dimension_numbers<[1], [0], [0], [1], [0, 0, 1, 1], [], []>} : vector<2x8xf32>, vector<8x32xf32>, vector<2x32xf32> -> vector<2x32xf32>
    %93 = arith.addf %91, %92 : vector<2x32xf32>
    %c1_67 = arith.constant 1 : index
    %c2_68 = arith.constant 2 : index
    %c0_69 = arith.constant 0 : index
    %c0_70 = arith.constant 0 : index
    %94 = vector.load %arg1[%c1_67, %c2_68, %c0_69, %c0_70] : memref<4x8x2x32xf32, #tpu.memory_space<vmem>>, vector<1x1x2x32xf32>
    %95 = vector.shape_cast %94 : vector<1x1x2x32xf32> to vector<2x32xf32>
    %cst_71 = arith.constant dense<0.000000e+00> : vector<2x32xf32>
    %96 = tpu.matmul %89, %8, %cst_71 {dimension_numbers = #tpu.dot_dimension_numbers<[1], [0], [0], [1], [0, 0, 1, 1], [], []>} : vector<2x8xf32>, vector<8x32xf32>, vector<2x32xf32> -> vector<2x32xf32>
    %97 = arith.addf %95, %96 : vector<2x32xf32>
    %c2_72 = arith.constant 2 : index
    %c2_73 = arith.constant 2 : index
    %c0_74 = arith.constant 0 : index
    %c0_75 = arith.constant 0 : index
    %98 = vector.load %arg1[%c2_72, %c2_73, %c0_74, %c0_75] : memref<4x8x2x32xf32, #tpu.memory_space<vmem>>, vector<1x1x2x32xf32>
    %99 = vector.shape_cast %98 : vector<1x1x2x32xf32> to vector<2x32xf32>
    %cst_76 = arith.constant dense<0.000000e+00> : vector<2x32xf32>
    %100 = tpu.matmul %89, %10, %cst_76 {dimension_numbers = #tpu.dot_dimension_numbers<[1], [0], [0], [1], [0, 0, 1, 1], [], []>} : vector<2x8xf32>, vector<8x32xf32>, vector<2x32xf32> -> vector<2x32xf32>
    %101 = arith.addf %99, %100 : vector<2x32xf32>
    %c3_77 = arith.constant 3 : index
    %c2_78 = arith.constant 2 : index
    %c0_79 = arith.constant 0 : index
    %c0_80 = arith.constant 0 : index
    %102 = vector.load %arg1[%c3_77, %c2_78, %c0_79, %c0_80] : memref<4x8x2x32xf32, #tpu.memory_space<vmem>>, vector<1x1x2x32xf32>
    %103 = vector.shape_cast %102 : vector<1x1x2x32xf32> to vector<2x32xf32>
    %cst_81 = arith.constant dense<0.000000e+00> : vector<2x32xf32>
    %104 = tpu.matmul %89, %12, %cst_81 {dimension_numbers = #tpu.dot_dimension_numbers<[1], [0], [0], [1], [0, 0, 1, 1], [], []>} : vector<2x8xf32>, vector<8x32xf32>, vector<2x32xf32> -> vector<2x32xf32>
    %105 = arith.addf %103, %104 : vector<2x32xf32>
    %106 = arith.negf %93 : vector<2x32xf32>
    %107 = math.exp %106 : vector<2x32xf32>
    %cst_82 = arith.constant 1.000000e+00 : f32
    %108 = vector.broadcast %cst_82 : f32 to vector<2x32xf32>
    %109 = arith.addf %108, %107 : vector<2x32xf32>
    %110 = arith.divf %108, %109 : vector<2x32xf32>
    %111 = arith.negf %97 : vector<2x32xf32>
    %112 = math.exp %111 : vector<2x32xf32>
    %cst_83 = arith.constant 1.000000e+00 : f32
    %113 = vector.broadcast %cst_83 : f32 to vector<2x32xf32>
    %114 = arith.addf %113, %112 : vector<2x32xf32>
    %115 = arith.divf %113, %114 : vector<2x32xf32>
    %116 = math.tanh %101 : vector<2x32xf32>
    %117 = arith.negf %105 : vector<2x32xf32>
    %118 = math.exp %117 : vector<2x32xf32>
    %cst_84 = arith.constant 1.000000e+00 : f32
    %119 = vector.broadcast %cst_84 : f32 to vector<2x32xf32>
    %120 = arith.addf %119, %118 : vector<2x32xf32>
    %121 = arith.divf %119, %120 : vector<2x32xf32>
    %122 = arith.mulf %115, %86 : vector<2x32xf32>
    %123 = arith.mulf %110, %116 : vector<2x32xf32>
    %124 = arith.addf %122, %123 : vector<2x32xf32>
    %125 = math.tanh %124 : vector<2x32xf32>
    %126 = arith.mulf %121, %125 : vector<2x32xf32>
    %cst_85 = arith.constant dense<0.000000e+00> : vector<2x8xf32>
    %127 = tpu.matmul %126, %13, %cst_85 {dimension_numbers = #tpu.dot_dimension_numbers<[1], [0], [0], [1], [0, 0, 1, 1], [], []>} : vector<2x32xf32>, vector<32x8xf32>, vector<2x8xf32> -> vector<2x8xf32>
    %c0_86 = arith.constant 0 : index
    %c3_87 = arith.constant 3 : index
    %c0_88 = arith.constant 0 : index
    %c0_89 = arith.constant 0 : index
    %128 = vector.load %arg1[%c0_86, %c3_87, %c0_88, %c0_89] : memref<4x8x2x32xf32, #tpu.memory_space<vmem>>, vector<1x1x2x32xf32>
    %129 = vector.shape_cast %128 : vector<1x1x2x32xf32> to vector<2x32xf32>
    %cst_90 = arith.constant dense<0.000000e+00> : vector<2x32xf32>
    %130 = tpu.matmul %127, %6, %cst_90 {dimension_numbers = #tpu.dot_dimension_numbers<[1], [0], [0], [1], [0, 0, 1, 1], [], []>} : vector<2x8xf32>, vector<8x32xf32>, vector<2x32xf32> -> vector<2x32xf32>
    %131 = arith.addf %129, %130 : vector<2x32xf32>
    %c1_91 = arith.constant 1 : index
    %c3_92 = arith.constant 3 : index
    %c0_93 = arith.constant 0 : index
    %c0_94 = arith.constant 0 : index
    %132 = vector.load %arg1[%c1_91, %c3_92, %c0_93, %c0_94] : memref<4x8x2x32xf32, #tpu.memory_space<vmem>>, vector<1x1x2x32xf32>
    %133 = vector.shape_cast %132 : vector<1x1x2x32xf32> to vector<2x32xf32>
    %cst_95 = arith.constant dense<0.000000e+00> : vector<2x32xf32>
    %134 = tpu.matmul %127, %8, %cst_95 {dimension_numbers = #tpu.dot_dimension_numbers<[1], [0], [0], [1], [0, 0, 1, 1], [], []>} : vector<2x8xf32>, vector<8x32xf32>, vector<2x32xf32> -> vector<2x32xf32>
    %135 = arith.addf %133, %134 : vector<2x32xf32>
    %c2_96 = arith.constant 2 : index
    %c3_97 = arith.constant 3 : index
    %c0_98 = arith.constant 0 : index
    %c0_99 = arith.constant 0 : index
    %136 = vector.load %arg1[%c2_96, %c3_97, %c0_98, %c0_99] : memref<4x8x2x32xf32, #tpu.memory_space<vmem>>, vector<1x1x2x32xf32>
    %137 = vector.shape_cast %136 : vector<1x1x2x32xf32> to vector<2x32xf32>
    %cst_100 = arith.constant dense<0.000000e+00> : vector<2x32xf32>
    %138 = tpu.matmul %127, %10, %cst_100 {dimension_numbers = #tpu.dot_dimension_numbers<[1], [0], [0], [1], [0, 0, 1, 1], [], []>} : vector<2x8xf32>, vector<8x32xf32>, vector<2x32xf32> -> vector<2x32xf32>
    %139 = arith.addf %137, %138 : vector<2x32xf32>
    %c3_101 = arith.constant 3 : index
    %c3_102 = arith.constant 3 : index
    %c0_103 = arith.constant 0 : index
    %c0_104 = arith.constant 0 : index
    %140 = vector.load %arg1[%c3_101, %c3_102, %c0_103, %c0_104] : memref<4x8x2x32xf32, #tpu.memory_space<vmem>>, vector<1x1x2x32xf32>
    %141 = vector.shape_cast %140 : vector<1x1x2x32xf32> to vector<2x32xf32>
    %cst_105 = arith.constant dense<0.000000e+00> : vector<2x32xf32>
    %142 = tpu.matmul %127, %12, %cst_105 {dimension_numbers = #tpu.dot_dimension_numbers<[1], [0], [0], [1], [0, 0, 1, 1], [], []>} : vector<2x8xf32>, vector<8x32xf32>, vector<2x32xf32> -> vector<2x32xf32>
    %143 = arith.addf %141, %142 : vector<2x32xf32>
    %144 = arith.negf %131 : vector<2x32xf32>
    %145 = math.exp %144 : vector<2x32xf32>
    %cst_106 = arith.constant 1.000000e+00 : f32
    %146 = vector.broadcast %cst_106 : f32 to vector<2x32xf32>
    %147 = arith.addf %146, %145 : vector<2x32xf32>
    %148 = arith.divf %146, %147 : vector<2x32xf32>
    %149 = arith.negf %135 : vector<2x32xf32>
    %150 = math.exp %149 : vector<2x32xf32>
    %cst_107 = arith.constant 1.000000e+00 : f32
    %151 = vector.broadcast %cst_107 : f32 to vector<2x32xf32>
    %152 = arith.addf %151, %150 : vector<2x32xf32>
    %153 = arith.divf %151, %152 : vector<2x32xf32>
    %154 = math.tanh %139 : vector<2x32xf32>
    %155 = arith.negf %143 : vector<2x32xf32>
    %156 = math.exp %155 : vector<2x32xf32>
    %cst_108 = arith.constant 1.000000e+00 : f32
    %157 = vector.broadcast %cst_108 : f32 to vector<2x32xf32>
    %158 = arith.addf %157, %156 : vector<2x32xf32>
    %159 = arith.divf %157, %158 : vector<2x32xf32>
    %160 = arith.mulf %153, %124 : vector<2x32xf32>
    %161 = arith.mulf %148, %154 : vector<2x32xf32>
    %162 = arith.addf %160, %161 : vector<2x32xf32>
    %163 = math.tanh %162 : vector<2x32xf32>
    %164 = arith.mulf %159, %163 : vector<2x32xf32>
    %cst_109 = arith.constant dense<0.000000e+00> : vector<2x8xf32>
    %165 = tpu.matmul %164, %13, %cst_109 {dimension_numbers = #tpu.dot_dimension_numbers<[1], [0], [0], [1], [0, 0, 1, 1], [], []>} : vector<2x32xf32>, vector<32x8xf32>, vector<2x8xf32> -> vector<2x8xf32>
    %c0_110 = arith.constant 0 : index
    %c4 = arith.constant 4 : index
    %c0_111 = arith.constant 0 : index
    %c0_112 = arith.constant 0 : index
    %166 = vector.load %arg1[%c0_110, %c4, %c0_111, %c0_112] : memref<4x8x2x32xf32, #tpu.memory_space<vmem>>, vector<1x1x2x32xf32>
    %167 = vector.shape_cast %166 : vector<1x1x2x32xf32> to vector<2x32xf32>
    %cst_113 = arith.constant dense<0.000000e+00> : vector<2x32xf32>
    %168 = tpu.matmul %165, %6, %cst_113 {dimension_numbers = #tpu.dot_dimension_numbers<[1], [0], [0], [1], [0, 0, 1, 1], [], []>} : vector<2x8xf32>, vector<8x32xf32>, vector<2x32xf32> -> vector<2x32xf32>
    %169 = arith.addf %167, %168 : vector<2x32xf32>
    %c1_114 = arith.constant 1 : index
    %c4_115 = arith.constant 4 : index
    %c0_116 = arith.constant 0 : index
    %c0_117 = arith.constant 0 : index
    %170 = vector.load %arg1[%c1_114, %c4_115, %c0_116, %c0_117] : memref<4x8x2x32xf32, #tpu.memory_space<vmem>>, vector<1x1x2x32xf32>
    %171 = vector.shape_cast %170 : vector<1x1x2x32xf32> to vector<2x32xf32>
    %cst_118 = arith.constant dense<0.000000e+00> : vector<2x32xf32>
    %172 = tpu.matmul %165, %8, %cst_118 {dimension_numbers = #tpu.dot_dimension_numbers<[1], [0], [0], [1], [0, 0, 1, 1], [], []>} : vector<2x8xf32>, vector<8x32xf32>, vector<2x32xf32> -> vector<2x32xf32>
    %173 = arith.addf %171, %172 : vector<2x32xf32>
    %c2_119 = arith.constant 2 : index
    %c4_120 = arith.constant 4 : index
    %c0_121 = arith.constant 0 : index
    %c0_122 = arith.constant 0 : index
    %174 = vector.load %arg1[%c2_119, %c4_120, %c0_121, %c0_122] : memref<4x8x2x32xf32, #tpu.memory_space<vmem>>, vector<1x1x2x32xf32>
    %175 = vector.shape_cast %174 : vector<1x1x2x32xf32> to vector<2x32xf32>
    %cst_123 = arith.constant dense<0.000000e+00> : vector<2x32xf32>
    %176 = tpu.matmul %165, %10, %cst_123 {dimension_numbers = #tpu.dot_dimension_numbers<[1], [0], [0], [1], [0, 0, 1, 1], [], []>} : vector<2x8xf32>, vector<8x32xf32>, vector<2x32xf32> -> vector<2x32xf32>
    %177 = arith.addf %175, %176 : vector<2x32xf32>
    %c3_124 = arith.constant 3 : index
    %c4_125 = arith.constant 4 : index
    %c0_126 = arith.constant 0 : index
    %c0_127 = arith.constant 0 : index
    %178 = vector.load %arg1[%c3_124, %c4_125, %c0_126, %c0_127] : memref<4x8x2x32xf32, #tpu.memory_space<vmem>>, vector<1x1x2x32xf32>
    %179 = vector.shape_cast %178 : vector<1x1x2x32xf32> to vector<2x32xf32>
    %cst_128 = arith.constant dense<0.000000e+00> : vector<2x32xf32>
    %180 = tpu.matmul %165, %12, %cst_128 {dimension_numbers = #tpu.dot_dimension_numbers<[1], [0], [0], [1], [0, 0, 1, 1], [], []>} : vector<2x8xf32>, vector<8x32xf32>, vector<2x32xf32> -> vector<2x32xf32>
    %181 = arith.addf %179, %180 : vector<2x32xf32>
    %182 = arith.negf %169 : vector<2x32xf32>
    %183 = math.exp %182 : vector<2x32xf32>
    %cst_129 = arith.constant 1.000000e+00 : f32
    %184 = vector.broadcast %cst_129 : f32 to vector<2x32xf32>
    %185 = arith.addf %184, %183 : vector<2x32xf32>
    %186 = arith.divf %184, %185 : vector<2x32xf32>
    %187 = arith.negf %173 : vector<2x32xf32>
    %188 = math.exp %187 : vector<2x32xf32>
    %cst_130 = arith.constant 1.000000e+00 : f32
    %189 = vector.broadcast %cst_130 : f32 to vector<2x32xf32>
    %190 = arith.addf %189, %188 : vector<2x32xf32>
    %191 = arith.divf %189, %190 : vector<2x32xf32>
    %192 = math.tanh %177 : vector<2x32xf32>
    %193 = arith.negf %181 : vector<2x32xf32>
    %194 = math.exp %193 : vector<2x32xf32>
    %cst_131 = arith.constant 1.000000e+00 : f32
    %195 = vector.broadcast %cst_131 : f32 to vector<2x32xf32>
    %196 = arith.addf %195, %194 : vector<2x32xf32>
    %197 = arith.divf %195, %196 : vector<2x32xf32>
    %198 = arith.mulf %191, %162 : vector<2x32xf32>
    %199 = arith.mulf %186, %192 : vector<2x32xf32>
    %200 = arith.addf %198, %199 : vector<2x32xf32>
    %201 = math.tanh %200 : vector<2x32xf32>
    %202 = arith.mulf %197, %201 : vector<2x32xf32>
    %cst_132 = arith.constant dense<0.000000e+00> : vector<2x8xf32>
    %203 = tpu.matmul %202, %13, %cst_132 {dimension_numbers = #tpu.dot_dimension_numbers<[1], [0], [0], [1], [0, 0, 1, 1], [], []>} : vector<2x32xf32>, vector<32x8xf32>, vector<2x8xf32> -> vector<2x8xf32>
    %c0_133 = arith.constant 0 : index
    %c5 = arith.constant 5 : index
    %c0_134 = arith.constant 0 : index
    %c0_135 = arith.constant 0 : index
    %204 = vector.load %arg1[%c0_133, %c5, %c0_134, %c0_135] : memref<4x8x2x32xf32, #tpu.memory_space<vmem>>, vector<1x1x2x32xf32>
    %205 = vector.shape_cast %204 : vector<1x1x2x32xf32> to vector<2x32xf32>
    %cst_136 = arith.constant dense<0.000000e+00> : vector<2x32xf32>
    %206 = tpu.matmul %203, %6, %cst_136 {dimension_numbers = #tpu.dot_dimension_numbers<[1], [0], [0], [1], [0, 0, 1, 1], [], []>} : vector<2x8xf32>, vector<8x32xf32>, vector<2x32xf32> -> vector<2x32xf32>
    %207 = arith.addf %205, %206 : vector<2x32xf32>
    %c1_137 = arith.constant 1 : index
    %c5_138 = arith.constant 5 : index
    %c0_139 = arith.constant 0 : index
    %c0_140 = arith.constant 0 : index
    %208 = vector.load %arg1[%c1_137, %c5_138, %c0_139, %c0_140] : memref<4x8x2x32xf32, #tpu.memory_space<vmem>>, vector<1x1x2x32xf32>
    %209 = vector.shape_cast %208 : vector<1x1x2x32xf32> to vector<2x32xf32>
    %cst_141 = arith.constant dense<0.000000e+00> : vector<2x32xf32>
    %210 = tpu.matmul %203, %8, %cst_141 {dimension_numbers = #tpu.dot_dimension_numbers<[1], [0], [0], [1], [0, 0, 1, 1], [], []>} : vector<2x8xf32>, vector<8x32xf32>, vector<2x32xf32> -> vector<2x32xf32>
    %211 = arith.addf %209, %210 : vector<2x32xf32>
    %c2_142 = arith.constant 2 : index
    %c5_143 = arith.constant 5 : index
    %c0_144 = arith.constant 0 : index
    %c0_145 = arith.constant 0 : index
    %212 = vector.load %arg1[%c2_142, %c5_143, %c0_144, %c0_145] : memref<4x8x2x32xf32, #tpu.memory_space<vmem>>, vector<1x1x2x32xf32>
    %213 = vector.shape_cast %212 : vector<1x1x2x32xf32> to vector<2x32xf32>
    %cst_146 = arith.constant dense<0.000000e+00> : vector<2x32xf32>
    %214 = tpu.matmul %203, %10, %cst_146 {dimension_numbers = #tpu.dot_dimension_numbers<[1], [0], [0], [1], [0, 0, 1, 1], [], []>} : vector<2x8xf32>, vector<8x32xf32>, vector<2x32xf32> -> vector<2x32xf32>
    %215 = arith.addf %213, %214 : vector<2x32xf32>
    %c3_147 = arith.constant 3 : index
    %c5_148 = arith.constant 5 : index
    %c0_149 = arith.constant 0 : index
    %c0_150 = arith.constant 0 : index
    %216 = vector.load %arg1[%c3_147, %c5_148, %c0_149, %c0_150] : memref<4x8x2x32xf32, #tpu.memory_space<vmem>>, vector<1x1x2x32xf32>
    %217 = vector.shape_cast %216 : vector<1x1x2x32xf32> to vector<2x32xf32>
    %cst_151 = arith.constant dense<0.000000e+00> : vector<2x32xf32>
    %218 = tpu.matmul %203, %12, %cst_151 {dimension_numbers = #tpu.dot_dimension_numbers<[1], [0], [0], [1], [0, 0, 1, 1], [], []>} : vector<2x8xf32>, vector<8x32xf32>, vector<2x32xf32> -> vector<2x32xf32>
    %219 = arith.addf %217, %218 : vector<2x32xf32>
    %220 = arith.negf %207 : vector<2x32xf32>
    %221 = math.exp %220 : vector<2x32xf32>
    %cst_152 = arith.constant 1.000000e+00 : f32
    %222 = vector.broadcast %cst_152 : f32 to vector<2x32xf32>
    %223 = arith.addf %222, %221 : vector<2x32xf32>
    %224 = arith.divf %222, %223 : vector<2x32xf32>
    %225 = arith.negf %211 : vector<2x32xf32>
    %226 = math.exp %225 : vector<2x32xf32>
    %cst_153 = arith.constant 1.000000e+00 : f32
    %227 = vector.broadcast %cst_153 : f32 to vector<2x32xf32>
    %228 = arith.addf %227, %226 : vector<2x32xf32>
    %229 = arith.divf %227, %228 : vector<2x32xf32>
    %230 = math.tanh %215 : vector<2x32xf32>
    %231 = arith.negf %219 : vector<2x32xf32>
    %232 = math.exp %231 : vector<2x32xf32>
    %cst_154 = arith.constant 1.000000e+00 : f32
    %233 = vector.broadcast %cst_154 : f32 to vector<2x32xf32>
    %234 = arith.addf %233, %232 : vector<2x32xf32>
    %235 = arith.divf %233, %234 : vector<2x32xf32>
    %236 = arith.mulf %229, %200 : vector<2x32xf32>
    %237 = arith.mulf %224, %230 : vector<2x32xf32>
    %238 = arith.addf %236, %237 : vector<2x32xf32>
    %239 = math.tanh %238 : vector<2x32xf32>
    %240 = arith.mulf %235, %239 : vector<2x32xf32>
    %cst_155 = arith.constant dense<0.000000e+00> : vector<2x8xf32>
    %241 = tpu.matmul %240, %13, %cst_155 {dimension_numbers = #tpu.dot_dimension_numbers<[1], [0], [0], [1], [0, 0, 1, 1], [], []>} : vector<2x32xf32>, vector<32x8xf32>, vector<2x8xf32> -> vector<2x8xf32>
    %c0_156 = arith.constant 0 : index
    %c6 = arith.constant 6 : index
    %c0_157 = arith.constant 0 : index
    %c0_158 = arith.constant 0 : index
    %242 = vector.load %arg1[%c0_156, %c6, %c0_157, %c0_158] : memref<4x8x2x32xf32, #tpu.memory_space<vmem>>, vector<1x1x2x32xf32>
    %243 = vector.shape_cast %242 : vector<1x1x2x32xf32> to vector<2x32xf32>
    %cst_159 = arith.constant dense<0.000000e+00> : vector<2x32xf32>
    %244 = tpu.matmul %241, %6, %cst_159 {dimension_numbers = #tpu.dot_dimension_numbers<[1], [0], [0], [1], [0, 0, 1, 1], [], []>} : vector<2x8xf32>, vector<8x32xf32>, vector<2x32xf32> -> vector<2x32xf32>
    %245 = arith.addf %243, %244 : vector<2x32xf32>
    %c1_160 = arith.constant 1 : index
    %c6_161 = arith.constant 6 : index
    %c0_162 = arith.constant 0 : index
    %c0_163 = arith.constant 0 : index
    %246 = vector.load %arg1[%c1_160, %c6_161, %c0_162, %c0_163] : memref<4x8x2x32xf32, #tpu.memory_space<vmem>>, vector<1x1x2x32xf32>
    %247 = vector.shape_cast %246 : vector<1x1x2x32xf32> to vector<2x32xf32>
    %cst_164 = arith.constant dense<0.000000e+00> : vector<2x32xf32>
    %248 = tpu.matmul %241, %8, %cst_164 {dimension_numbers = #tpu.dot_dimension_numbers<[1], [0], [0], [1], [0, 0, 1, 1], [], []>} : vector<2x8xf32>, vector<8x32xf32>, vector<2x32xf32> -> vector<2x32xf32>
    %249 = arith.addf %247, %248 : vector<2x32xf32>
    %c2_165 = arith.constant 2 : index
    %c6_166 = arith.constant 6 : index
    %c0_167 = arith.constant 0 : index
    %c0_168 = arith.constant 0 : index
    %250 = vector.load %arg1[%c2_165, %c6_166, %c0_167, %c0_168] : memref<4x8x2x32xf32, #tpu.memory_space<vmem>>, vector<1x1x2x32xf32>
    %251 = vector.shape_cast %250 : vector<1x1x2x32xf32> to vector<2x32xf32>
    %cst_169 = arith.constant dense<0.000000e+00> : vector<2x32xf32>
    %252 = tpu.matmul %241, %10, %cst_169 {dimension_numbers = #tpu.dot_dimension_numbers<[1], [0], [0], [1], [0, 0, 1, 1], [], []>} : vector<2x8xf32>, vector<8x32xf32>, vector<2x32xf32> -> vector<2x32xf32>
    %253 = arith.addf %251, %252 : vector<2x32xf32>
    %c3_170 = arith.constant 3 : index
    %c6_171 = arith.constant 6 : index
    %c0_172 = arith.constant 0 : index
    %c0_173 = arith.constant 0 : index
    %254 = vector.load %arg1[%c3_170, %c6_171, %c0_172, %c0_173] : memref<4x8x2x32xf32, #tpu.memory_space<vmem>>, vector<1x1x2x32xf32>
    %255 = vector.shape_cast %254 : vector<1x1x2x32xf32> to vector<2x32xf32>
    %cst_174 = arith.constant dense<0.000000e+00> : vector<2x32xf32>
    %256 = tpu.matmul %241, %12, %cst_174 {dimension_numbers = #tpu.dot_dimension_numbers<[1], [0], [0], [1], [0, 0, 1, 1], [], []>} : vector<2x8xf32>, vector<8x32xf32>, vector<2x32xf32> -> vector<2x32xf32>
    %257 = arith.addf %255, %256 : vector<2x32xf32>
    %258 = arith.negf %245 : vector<2x32xf32>
    %259 = math.exp %258 : vector<2x32xf32>
    %cst_175 = arith.constant 1.000000e+00 : f32
    %260 = vector.broadcast %cst_175 : f32 to vector<2x32xf32>
    %261 = arith.addf %260, %259 : vector<2x32xf32>
    %262 = arith.divf %260, %261 : vector<2x32xf32>
    %263 = arith.negf %249 : vector<2x32xf32>
    %264 = math.exp %263 : vector<2x32xf32>
    %cst_176 = arith.constant 1.000000e+00 : f32
    %265 = vector.broadcast %cst_176 : f32 to vector<2x32xf32>
    %266 = arith.addf %265, %264 : vector<2x32xf32>
    %267 = arith.divf %265, %266 : vector<2x32xf32>
    %268 = math.tanh %253 : vector<2x32xf32>
    %269 = arith.negf %257 : vector<2x32xf32>
    %270 = math.exp %269 : vector<2x32xf32>
    %cst_177 = arith.constant 1.000000e+00 : f32
    %271 = vector.broadcast %cst_177 : f32 to vector<2x32xf32>
    %272 = arith.addf %271, %270 : vector<2x32xf32>
    %273 = arith.divf %271, %272 : vector<2x32xf32>
    %274 = arith.mulf %267, %238 : vector<2x32xf32>
    %275 = arith.mulf %262, %268 : vector<2x32xf32>
    %276 = arith.addf %274, %275 : vector<2x32xf32>
    %277 = math.tanh %276 : vector<2x32xf32>
    %278 = arith.mulf %273, %277 : vector<2x32xf32>
    %cst_178 = arith.constant dense<0.000000e+00> : vector<2x8xf32>
    %279 = tpu.matmul %278, %13, %cst_178 {dimension_numbers = #tpu.dot_dimension_numbers<[1], [0], [0], [1], [0, 0, 1, 1], [], []>} : vector<2x32xf32>, vector<32x8xf32>, vector<2x8xf32> -> vector<2x8xf32>
    %c0_179 = arith.constant 0 : index
    %c7 = arith.constant 7 : index
    %c0_180 = arith.constant 0 : index
    %c0_181 = arith.constant 0 : index
    %280 = vector.load %arg1[%c0_179, %c7, %c0_180, %c0_181] : memref<4x8x2x32xf32, #tpu.memory_space<vmem>>, vector<1x1x2x32xf32>
    %281 = vector.shape_cast %280 : vector<1x1x2x32xf32> to vector<2x32xf32>
    %cst_182 = arith.constant dense<0.000000e+00> : vector<2x32xf32>
    %282 = tpu.matmul %279, %6, %cst_182 {dimension_numbers = #tpu.dot_dimension_numbers<[1], [0], [0], [1], [0, 0, 1, 1], [], []>} : vector<2x8xf32>, vector<8x32xf32>, vector<2x32xf32> -> vector<2x32xf32>
    %283 = arith.addf %281, %282 : vector<2x32xf32>
    %c1_183 = arith.constant 1 : index
    %c7_184 = arith.constant 7 : index
    %c0_185 = arith.constant 0 : index
    %c0_186 = arith.constant 0 : index
    %284 = vector.load %arg1[%c1_183, %c7_184, %c0_185, %c0_186] : memref<4x8x2x32xf32, #tpu.memory_space<vmem>>, vector<1x1x2x32xf32>
    %285 = vector.shape_cast %284 : vector<1x1x2x32xf32> to vector<2x32xf32>
    %cst_187 = arith.constant dense<0.000000e+00> : vector<2x32xf32>
    %286 = tpu.matmul %279, %8, %cst_187 {dimension_numbers = #tpu.dot_dimension_numbers<[1], [0], [0], [1], [0, 0, 1, 1], [], []>} : vector<2x8xf32>, vector<8x32xf32>, vector<2x32xf32> -> vector<2x32xf32>
    %287 = arith.addf %285, %286 : vector<2x32xf32>
    %c2_188 = arith.constant 2 : index
    %c7_189 = arith.constant 7 : index
    %c0_190 = arith.constant 0 : index
    %c0_191 = arith.constant 0 : index
    %288 = vector.load %arg1[%c2_188, %c7_189, %c0_190, %c0_191] : memref<4x8x2x32xf32, #tpu.memory_space<vmem>>, vector<1x1x2x32xf32>
    %289 = vector.shape_cast %288 : vector<1x1x2x32xf32> to vector<2x32xf32>
    %cst_192 = arith.constant dense<0.000000e+00> : vector<2x32xf32>
    %290 = tpu.matmul %279, %10, %cst_192 {dimension_numbers = #tpu.dot_dimension_numbers<[1], [0], [0], [1], [0, 0, 1, 1], [], []>} : vector<2x8xf32>, vector<8x32xf32>, vector<2x32xf32> -> vector<2x32xf32>
    %291 = arith.addf %289, %290 : vector<2x32xf32>
    %c3_193 = arith.constant 3 : index
    %c7_194 = arith.constant 7 : index
    %c0_195 = arith.constant 0 : index
    %c0_196 = arith.constant 0 : index
    %292 = vector.load %arg1[%c3_193, %c7_194, %c0_195, %c0_196] : memref<4x8x2x32xf32, #tpu.memory_space<vmem>>, vector<1x1x2x32xf32>
    %293 = vector.shape_cast %292 : vector<1x1x2x32xf32> to vector<2x32xf32>
    %cst_197 = arith.constant dense<0.000000e+00> : vector<2x32xf32>
    %294 = tpu.matmul %279, %12, %cst_197 {dimension_numbers = #tpu.dot_dimension_numbers<[1], [0], [0], [1], [0, 0, 1, 1], [], []>} : vector<2x8xf32>, vector<8x32xf32>, vector<2x32xf32> -> vector<2x32xf32>
    %295 = arith.addf %293, %294 : vector<2x32xf32>
    %296 = arith.negf %283 : vector<2x32xf32>
    %297 = math.exp %296 : vector<2x32xf32>
    %cst_198 = arith.constant 1.000000e+00 : f32
    %298 = vector.broadcast %cst_198 : f32 to vector<2x32xf32>
    %299 = arith.addf %298, %297 : vector<2x32xf32>
    %300 = arith.divf %298, %299 : vector<2x32xf32>
    %301 = arith.negf %287 : vector<2x32xf32>
    %302 = math.exp %301 : vector<2x32xf32>
    %cst_199 = arith.constant 1.000000e+00 : f32
    %303 = vector.broadcast %cst_199 : f32 to vector<2x32xf32>
    %304 = arith.addf %303, %302 : vector<2x32xf32>
    %305 = arith.divf %303, %304 : vector<2x32xf32>
    %306 = math.tanh %291 : vector<2x32xf32>
    %307 = arith.negf %295 : vector<2x32xf32>
    %308 = math.exp %307 : vector<2x32xf32>
    %cst_200 = arith.constant 1.000000e+00 : f32
    %309 = vector.broadcast %cst_200 : f32 to vector<2x32xf32>
    %310 = arith.addf %309, %308 : vector<2x32xf32>
    %311 = arith.divf %309, %310 : vector<2x32xf32>
    %312 = arith.mulf %305, %276 : vector<2x32xf32>
    %313 = arith.mulf %300, %306 : vector<2x32xf32>
    %314 = arith.addf %312, %313 : vector<2x32xf32>
    %315 = math.tanh %314 : vector<2x32xf32>
    %316 = arith.mulf %311, %315 : vector<2x32xf32>
    %cst_201 = arith.constant dense<0.000000e+00> : vector<2x8xf32>
    %317 = tpu.matmul %316, %13, %cst_201 {dimension_numbers = #tpu.dot_dimension_numbers<[1], [0], [0], [1], [0, 0, 1, 1], [], []>} : vector<2x32xf32>, vector<32x8xf32>, vector<2x8xf32> -> vector<2x8xf32>
    %c0_202 = arith.constant 0 : index
    %c0_203 = arith.constant 0 : index
    %c0_204 = arith.constant 0 : index
    %318 = vector.load %arg4[%c0_202, %c0_203, %c0_204] : memref<1x2x8xf32, #tpu.memory_space<vmem>>, vector<1x2x8xf32>
    %319 = vector.shape_cast %318 : vector<1x2x8xf32> to vector<2x8xf32>
    %320 = vector.shape_cast %317 : vector<2x8xf32> to vector<1x2x8xf32>
    tpu.vector_store %arg4[%c0_202, %c0_203, %c0_204], %320 {strides = array<i32>} : memref<1x2x8xf32, #tpu.memory_space<vmem>>, vector<1x2x8xf32>,
    %c0_205 = arith.constant 0 : index
    %c0_206 = arith.constant 0 : index
    %321 = vector.load %arg5[%c0_205, %c0_206] : memref<2x8xf32, #tpu.memory_space<vmem>>, vector<2x8xf32>
    tpu.vector_store %arg5[%c0_205, %c0_206], %317 {strides = array<i32>} : memref<2x8xf32, #tpu.memory_space<vmem>>, vector<2x8xf32>,
    %c0_207 = arith.constant 0 : index
    %c0_208 = arith.constant 0 : index
    %322 = vector.load %arg6[%c0_207, %c0_208] : memref<2x32xf32, #tpu.memory_space<vmem>>, vector<2x32xf32>
    tpu.vector_store %arg6[%c0_207, %c0_208], %314 {strides = array<i32>} : memref<2x32xf32, #tpu.memory_space<vmem>>, vector<2x32xf32>,
    return
  }
  func.func @transform_0(%arg0: i32) -> (i32, i32, i32, i32) {
    %c0_i32 = arith.constant 0 : i32
    %c0_i32_0 = arith.constant 0 : i32
    %c0_i32_1 = arith.constant 0 : i32
    %c0_i32_2 = arith.constant 0 : i32
    return %c0_i32, %arg0, %c0_i32_0, %c0_i32_1 : i32, i32, i32, i32
  }
  func.func @transform_1(%arg0: i32) -> (i32, i32, i32) {
    %c0_i32 = arith.constant 0 : i32
    %c0_i32_0 = arith.constant 0 : i32
    %c0_i32_1 = arith.constant 0 : i32
    %c0_i32_2 = arith.constant 0 : i32
    return %c0_i32, %c0_i32_0, %c0_i32_1 : i32, i32, i32
  }
  func.func @transform_2(%arg0: i32) -> (i32, i32) {
    %c0_i32 = arith.constant 0 : i32
    %c0_i32_0 = arith.constant 0 : i32
    %c0_i32_1 = arith.constant 0 : i32
    return %c0_i32, %c0_i32_0 : i32, i32
  }
  func.func @transform_3(%arg0: i32) -> (i32, i32, i32) {
    %c0_i32 = arith.constant 0 : i32
    %c0_i32_0 = arith.constant 0 : i32
    %c0_i32_1 = arith.constant 0 : i32
    %c0_i32_2 = arith.constant 0 : i32
    return %c0_i32, %c0_i32_0, %c0_i32_1 : i32, i32, i32
  }
}

</mosaic_0001>

<bundles_post_ra>
// kernel: tpu_custom_call.1
= control target key start
LH: loop header
LB: loop body
LE: loop exit
PB: predicated region body
PF: predicated region fallthrough
CT: control target
= control target key end

     0   :  { %8 = vsyncpa [#allocation5], 0  ;;  %s4191_s0 = inlined_call_operand.hbm [shape: f32[4,8,2,32], index: 0, kind: input, shape index: {}]   ;;  %s4192_s1 = inlined_call_operand.vmem [shape: f32[4,8,32], index: 1, kind: input, shape index: {}]   ;;  %s4193_s2 = inlined_call_operand.vmem [shape: f32[32,8], index: 2, kind: input, shape index: {}]   ;;  %s4194_s3 = inlined_call_operand.hbm [shape: f32[1,2,8], index: 3, kind: output, shape index: {}]  }
   0x1   :  { %9 = vsyncpa [#allocation6], 0  ;;  %s3857_s12 = smov [#allocation4]   ;;  %s3809_s16 = scalar_lea.hbm %s4191_s0, 1024 }
   0x2   :  { %s15_s13 = sshll.u32 %s3857_s12, 4  ;;  %p3810_p0 = scmp.ne.s32.totalorder %s4191_s0, %s3809_s16  ;;  %s16_s13 = int_to_ptr.vmem [resolvable:$true] %s15_s13 }
   0x3   :  { %p3813_p1 = scmp.lt.u32.totalorder %s3809_s16, %s4191_s0 }
   0x5   :  { %p3815_p2 = pnand %p3813_p1, %p3810_p0 }
   0x7   :  { %3818 = shalt.err (!%p3815_p2)
}
   0x8   :  { %s3819_s21 = scalar_lea.vmem %s16_s13, 1024  ;;  %p3824_p4 = scmp.lt.s32.totalorder %s16_s13, %s16_s13 }
   0x9   :  { %p3820_p3 = scmp.ne.s32.totalorder %s16_s13, %s3819_s21  ;;  %p3825_p5 = scmp.lt.s32.totalorder %s3819_s21, %s3819_s21 }
   0xb   :  { %p3826_p6 = por %p3825_p5, %p3824_p4 }
   0xd   :  { %p3827_p7 = pnand %p3826_p6, %p3820_p3 }
   0xf   :  { %3830 = shalt.err (!%p3827_p7)
}
  0x10   :  { %s3858_s22 = smov 32   ;;  %s3859_s23 = smov 2  }
  0x11   :  { %21 = dma.hbm_to_vmem [thread:$0]  %s4191_s0, 1024, %s16_s13, [#allocation5], %s3858_s22, %s3858_s22, %s3859_s23  }
  0x12   :  { %3853 = dma.done.wait [#allocation5], 1024  }
  0x13   :  { %3854 = vsyncadd [#allocation5], 4294966272  ;;  %vm33_vm0 = vcmask 58368   ;;  %v3860_v0 = vmov 0.0   ;;  %vm3861_vm1 = vmmov 0   ;;  %vm51_vm2 = vcmask 64512  }
  0x14   :  { %3378 = vmatprep.subr.mxu1 %v3860_v0  ;;  %3380 = vmatprep.mubr.msk.f32.mxu1 %vm3861_vm1, %v3860_v0  ;;  %34 = vst.msk [vmem:[#allocation2] sm:$0x3] %vm33_vm0, %v3860_v0  ;;  %v3907_v1 = vld [vmem:[%s4192_s1] sm:$0xff]  ;;  %v3912_v2 = vld [vmem:[%s4192_s1 + $0x8] sm:$0xff]  ;;  %v3917_v3 = vld [vmem:[%s4192_s1 + $0x10] sm:$0xff]  ;;  %vm35_vm3 = vcmask 254976  }
  0x15   :  { %3388 = vmatprep.subr.mxu0 %v3860_v0  ;;  %3390 = vmatprep.mubr.msk.f32.mxu0 %vm3861_vm1, %v3860_v0  ;;  %v3931_v5 = vld [vmem:[%s4192_s1 + $0x18] sm:$0xff]  ;;  %36 = vst.msk [vmem:[#allocation3] sm:$0x3] %vm35_vm3, %v3860_v0  ;;  %v46_v6 = vld [vmem:[%s4193_s2] sm:$0xff]  ;;  %v47_v7 = vld [vmem:[%s4193_s2 + $0x8] sm:$0xff]  ;;  %v3862_v9 = vmov 0.0|0.0  }
  0x16   :  { %3379 = vmatpush3.msra.mxu1 %v3907_v1  ;;  %3389 = vmatpush3.msra.mxu0 %v3917_v3  ;;  %v48_v8 = vld [vmem:[%s4193_s2 + $0x10] sm:$0xff]  ;;  %v3957_v10 = vpack.c.bf16 %v47_v7, %v46_v6  ;;  %v49_v11 = vld [vmem:[%s4193_s2 + $0x18] sm:$0xff]  ;;  %v50_v13 = vld [vmem:[#allocation4] sm:$0x3]  ;;  %vm369_vm4 = vcmask 261120   ;;  %s3863_s2 = smov [#allocation7]  }
  0x17   :  { %3383 = vmatprep.subr.mxu1 %v3860_v0  ;;  %3626 = vmatprep.subr.bf16.mxu0 %v3862_v9  ;;  %v3963_v12 = vpack.c.bf16 %v49_v11, %v48_v8  ;;  %v127_v17 = vld [vmem:[#allocation4 + $0x10] sm:$0x3]  ;;  %v200_v27 = vld [vmem:[#allocation4 + $0x20] sm:$0x3]  ;;  %v444_v50 = vld [vmem:[#allocation4 + $0x2] sm:$0x3] }
  0x18   :  { %v273_v24 = vld [vmem:[#allocation4 + $0x30] sm:$0x3]  ;;  %v520_v56 = vld [vmem:[#allocation4 + $0x12] sm:$0x3]  ;;  %v593_v6 = vld [vmem:[#allocation4 + $0x22] sm:$0x3] }
  0x19   :  { %v666_v62 = vld [vmem:[#allocation4 + $0x32] sm:$0x3]  ;;  %s3198_s13 = sshll.u32 %s3863_s2, 4  ;;  %s3199_s13 = int_to_ptr.vmem [resolvable:$true] %s3198_s13 }
  0x1a   :  { %s3831_s14 = scalar_lea.vmem %s3199_s13, 32  ;;  %p3836_p9 = scmp.lt.s32.totalorder %s3199_s13, %s3199_s13 }
  0x1b   :  { %v37_v4 = vld [vmem:[#allocation2] sm:$0x3]  ;;  %p3832_p8 = scmp.ne.s32.totalorder %s3199_s13, %s3831_s14  ;;  %p3837_p10 = scmp.lt.s32.totalorder %s3831_s14, %s3831_s14 }
  0x1c   :  { %3381 = vmatmul.mubr.msk.f32.vlgmr.msra.gmra.mrb[0].mxu1 %vm51_vm2, %v37_v4  ;;  %3391 = vmatmul.mubr.msk.f32.vlgmr.msra.gmra.mrb[0].mxu0 %vm51_vm2, %v37_v4  ;;  %v38_v40 = vld [vmem:[#allocation3] sm:$0x3] }
  0x1d   :  { %3384 = vmatpush3.msra.mxu1 %v3912_v2  ;;  %3385 = vmatprep.mubr.msk.f32.mxu1 %vm3861_vm1, %v3860_v0  ;;  %p3838_p11 = por %p3837_p10, %p3836_p9 }
  0x1e   :  { %3393 = vmatprep.subr.mxu1 %v3860_v0  ;;  %3406 = vmatprep.mubr.msk.f32.mxu0 %vm3861_vm1, %v3860_v0 }
  0x1f   :  { %3628 = vmatpush3.bf16.msra.mxu0 %v3957_v10  ;;  %p3839_p12 = pnand %p3838_p11, %p3832_p8 }
  0x20   :  { %3386 = vmatmul.mubr.msk.f32.vlgmr.msra.gmra.mrb[2].mxu1 %vm51_vm2, %v37_v4  ;;  %3629 = vmatprep.subr.bf16.mxu0 %v3862_v9 }
  0x21   :  { %3394 = vmatpush3.msra.mxu1 %v3931_v5  ;;  %3395 = vmatprep.mubr.msk.f32.mxu1 %vm3861_vm1, %v3860_v0 }
  0x22   :  { %3409 = vmatprep.subr.mxu1 %v3860_v0 }
  0x23   :  { %3631 = vmatpush3.bf16.msra.mxu0 %v3963_v12 }
  0x24   :  { %3396 = vmatmul.mubr.msk.f32.vlgmr.msra.gmra.mrb[4].mxu1 %vm51_vm2, %v37_v4  ;;  %3419 = vmatprep.subr.mxu0 %v3860_v0 }
  0x25   :  { %3410 = vmatpush3.msra.mxu1 %v3907_v1  ;;  %3411 = vmatprep.mubr.msk.f32.mxu1 %vm3861_vm1, %v3860_v0 }
  0x26   :  { %3414 = vmatprep.subr.mxu1 %v3860_v0 }
  0xef   :  { %v121_v14 = vpop.f32.mrb[0].mxu1  ;;  %v267_v18 = vpop.f32.mrb[0].mxu0 }
  0xf0   :  { %v125_v15 = vadd.f32 %v121_v14, %v50_v13  ;;  %v3382_v16 = vpop.f32.mrb[1].mxu1  ;;  %v3392_v20 = vpop.f32.mrb[1].mxu0  ;;  %v271_v30 = vadd.f32 %v267_v18, %v200_v27 }
  0xf2   :  { %v3214_v19 = vmul.f32 -1.442695, %v125_v15 }
  0xf3   :  { %v194_v21 = vpop.f32.mrb[2].mxu1 }
  0xf4   :  { %3681 = vpow2.f32 %v3214_v19  ;;  %v198_v22 = vadd.f32 %v194_v21, %v127_v17  ;;  %v3387_v23 = vpop.f32.mrb[3].mxu1 }
  0xf6   :  { %v3215_v25 = vmul.f32 -1.442695, %v198_v22 }
  0xf7   :  { %v340_v26 = vpop.f32.mrb[4].mxu1 }
  0xf8   :  { %3683 = vpow2.f32 %v3215_v25  ;;  %v344_v28 = vadd.f32 %v340_v26, %v273_v24  ;;  %v3397_v29 = vpop.f32.mrb[5].mxu1 }
  0xf9   :  { %3685 = vtanh.f32 %v271_v30  ;;  %v836_v30 = vld [vmem:[#allocation4 + $0x4] sm:$0x3] }
  0xfa   :  { %v3216_v31 = vmul.f32 -1.442695, %v344_v28 }
  0xfc   :  { %3687 = vpow2.f32 %v3216_v31 }
  0xfe   :  { %v3682_v32 = vpop.eup %3681 }
  0xff   :  { %v348_v33 = vadd.f32 1.0, %v3682_v32 }
 0x101   :  { %3689 = vrcp.f32 %v348_v33 }
 0x102   :  { %v3684_v34 = vpop.eup %3683 }
 0x103   :  { %v354_v35 = vadd.f32 1.0, %v3684_v34  ;;  %v3686_v36 = vpop.eup %3685 }
 0x105   :  { %3691 = vrcp.f32 %v354_v35 }
 0x106   :  { %v3688_v37 = vpop.eup %3687 }
 0x107   :  { %v361_v41 = vadd.f32 1.0, %v3688_v37 }
 0x109   :  { %3693 = vrcp.f32 %v361_v41 }
 0x10b   :  { %v3690_v38 = vpop.eup %3689 }
 0x10c   :  { %v365_v39 = vmul.f32 %v3690_v38, %v3686_v36  ;;  %v912_v36 = vld [vmem:[#allocation4 + $0x14] sm:$0x3] }
 0x10f   :  { %v3692_v42 = vpop.eup %3691 }
 0x110   :  { %v364_v43 = vmul.f32 %v3692_v42, %v38_v40  ;;  %v1058_v42 = vld [vmem:[#allocation4 + $0x34] sm:$0x3] }
 0x112   :  { %v3968_v44 = vadd.f32 %v365_v39, %v364_v43 }
 0x113   :  { %v3694_v45 = vpop.eup %3693 }
 0x114   :  { %3695 = vtanh.f32 %v3968_v44 }
 0x11e   :  { %v3696_v46 = vpop.eup %3695 }
 0x11f   :  { %v368_v47 = vmul.f32 %v3696_v46, %v3694_v45  ;;  %v985_v45 = vld [vmem:[#allocation4 + $0x24] sm:$0x3] }
 0x121   :  { %3407 = vmatmul.mubr.msk.f32.vlgmr.msra.gmra.mrb[2].mxu0 %vm369_vm4, %v368_v47 }
 0x122   :  { %3420 = vmatpush3.msra.mxu0 %v3917_v3  ;;  %3421 = vmatprep.mubr.msk.f32.mxu0 %vm3861_vm1, %v3860_v0 }
 0x123   :  { %3632 = vmatprep.subr.bf16.mxu0 %v3862_v9 }
 0x1f4   :  { %v439_v48 = vpop.f32.mrb[2].mxu0 }
 0x1f5   :  { %v3408_v49 = vpop.f32.mrb[3].mxu0  ;;  %3412 = vmatmul.mubr.msk.f32.vlgmr.msra.gmra.mrb[6].mxu1 %vm51_vm2, %v439_v48  ;;  %3422 = vmatmul.mubr.msk.f32.vlgmr.msra.gmra.mrb[4].mxu0 %vm51_vm2, %v439_v48 }
 0x1f6   :  { %3415 = vmatpush3.msra.mxu1 %v3912_v2  ;;  %3416 = vmatprep.mubr.msk.f32.mxu1 %vm3861_vm1, %v3860_v0 }
 0x1f7   :  { %3424 = vmatprep.subr.mxu1 %v3860_v0  ;;  %3634 = vmatpush3.bf16.msra.mxu0 %v3957_v10 }
 0x1f8   :  { %3635 = vmatprep.subr.bf16.mxu0 %v3862_v9  ;;  %3437 = vmatprep.mubr.msk.f32.mxu0 %vm3861_vm1, %v3860_v0 }
 0x1f9   :  { %3417 = vmatmul.mubr.msk.f32.vlgmr.msra.gmra.mrb[8].mxu1 %vm51_vm2, %v439_v48 }
 0x1fa   :  { %3425 = vmatpush3.msra.mxu1 %v3931_v5  ;;  %3426 = vmatprep.mubr.msk.f32.mxu1 %vm3861_vm1, %v3860_v0 }
 0x1fb   :  { %3637 = vmatpush3.bf16.msra.mxu0 %v3963_v12  ;;  %3440 = vmatprep.subr.mxu1 %v3860_v0 }
 0x1fc   :  { %3450 = vmatprep.subr.mxu0 %v3860_v0 }
 0x1fd   :  { %3427 = vmatmul.mubr.msk.f32.vlgmr.msra.gmra.mrb[10].mxu1 %vm51_vm2, %v439_v48 }
 0x1fe   :  { %3441 = vmatpush3.msra.mxu1 %v3907_v1  ;;  %3442 = vmatprep.mubr.msk.f32.mxu1 %vm3861_vm1, %v3860_v0 }
 0x1ff   :  { %3445 = vmatprep.subr.mxu1 %v3860_v0 }
 0x2c8   :  { %v514_v51 = vpop.f32.mrb[6].mxu1  ;;  %v660_v52 = vpop.f32.mrb[4].mxu0 }
 0x2c9   :  { %v518_v53 = vadd.f32 %v514_v51, %v444_v50  ;;  %v3413_v54 = vpop.f32.mrb[7].mxu1  ;;  %v3423_v55 = vpop.f32.mrb[5].mxu0  ;;  %v664_v8 = vadd.f32 %v660_v52, %v593_v6 }
 0x2cb   :  { %v3222_v57 = vmul.f32 -1.442695, %v518_v53 }
 0x2cc   :  { %v587_v58 = vpop.f32.mrb[8].mxu1 }
 0x2cd   :  { %3697 = vpow2.f32 %v3222_v57  ;;  %v591_v59 = vadd.f32 %v587_v58, %v520_v56  ;;  %v3418_v60 = vpop.f32.mrb[9].mxu1 }
 0x2cf   :  { %v3223_v61 = vmul.f32 -1.442695, %v591_v59 }
 0x2d0   :  { %v733_v63 = vpop.f32.mrb[10].mxu1 }
 0x2d1   :  { %3699 = vpow2.f32 %v3223_v61  ;;  %v3428_v4 = vpop.f32.mrb[11].mxu1  ;;  %v737_v7 = vadd.f32 %v733_v63, %v666_v62 }
 0x2d2   :  { %3701 = vtanh.f32 %v664_v8 }
 0x2d3   :  { %v3224_v13 = vmul.f32 -1.442695, %v737_v7  ;;  %v1228_v7 = vld [vmem:[#allocation4 + $0x6] sm:$0x3] }
 0x2d7   :  { %v3698_v11 = vpop.eup %3697 }
 0x2d8   :  { %v741_v14 = vadd.f32 1.0, %v3698_v11 }
 0x2da   :  { %3703 = vrcp.f32 %v741_v14 }
 0x2db   :  { %v3700_v15 = vpop.eup %3699  ;;  %3705 = vpow2.f32 %v3224_v13 }
 0x2dc   :  { %v747_v16 = vadd.f32 1.0, %v3700_v15  ;;  %v3702_v17 = vpop.eup %3701 }
 0x2de   :  { %3707 = vrcp.f32 %v747_v16  ;;  %v1304_v16 = vld [vmem:[#allocation4 + $0x16] sm:$0x3] }
 0x2e4   :  { %v3704_v18 = vpop.eup %3703 }
 0x2e5   :  { %v3706_v19 = vpop.eup %3705  ;;  %v758_v20 = vmul.f32 %v3704_v18, %v3702_v17 }
 0x2e6   :  { %v754_v22 = vadd.f32 1.0, %v3706_v19 }
 0x2e8   :  { %v3708_v21 = vpop.eup %3707  ;;  %3709 = vrcp.f32 %v754_v22  ;;  %v1450_v22 = vld [vmem:[#allocation4 + $0x36] sm:$0x3] }
 0x2e9   :  { %v757_v23 = vmul.f32 %v3708_v21, %v3968_v44 }
 0x2eb   :  { %v3999_v24 = vadd.f32 %v758_v20, %v757_v23 }
 0x2ed   :  { %3711 = vtanh.f32 %v3999_v24 }
 0x2f2   :  { %v3710_v25 = vpop.eup %3709 }
 0x2f7   :  { %v3712_v26 = vpop.eup %3711 }
 0x2f8   :  { %v761_v27 = vmul.f32 %v3712_v26, %v3710_v25  ;;  %v1377_v25 = vld [vmem:[#allocation4 + $0x26] sm:$0x3] }
 0x2fa   :  { %3438 = vmatmul.mubr.msk.f32.vlgmr.msra.gmra.mrb[6].mxu0 %vm369_vm4, %v761_v27 }
 0x2fb   :  { %3451 = vmatpush3.msra.mxu0 %v3917_v3  ;;  %3452 = vmatprep.mubr.msk.f32.mxu0 %vm3861_vm1, %v3860_v0 }
 0x2fc   :  { %3638 = vmatprep.subr.bf16.mxu0 %v3862_v9 }
 0x3cd   :  { %v831_v28 = vpop.f32.mrb[6].mxu0 }
 0x3ce   :  { %v3439_v29 = vpop.f32.mrb[7].mxu0  ;;  %3443 = vmatmul.mubr.msk.f32.vlgmr.msra.gmra.mrb[12].mxu1 %vm51_vm2, %v831_v28  ;;  %3453 = vmatmul.mubr.msk.f32.vlgmr.msra.gmra.mrb[8].mxu0 %vm51_vm2, %v831_v28 }
 0x3cf   :  { %3446 = vmatpush3.msra.mxu1 %v3912_v2  ;;  %3447 = vmatprep.mubr.msk.f32.mxu1 %vm3861_vm1, %v3860_v0 }
 0x3d0   :  { %3455 = vmatprep.subr.mxu1 %v3860_v0  ;;  %3640 = vmatpush3.bf16.msra.mxu0 %v3957_v10 }
 0x3d1   :  { %3641 = vmatprep.subr.bf16.mxu0 %v3862_v9  ;;  %3468 = vmatprep.mubr.msk.f32.mxu0 %vm3861_vm1, %v3860_v0 }
 0x3d2   :  { %3448 = vmatmul.mubr.msk.f32.vlgmr.msra.gmra.mrb[14].mxu1 %vm51_vm2, %v831_v28 }
 0x3d3   :  { %3456 = vmatpush3.msra.mxu1 %v3931_v5  ;;  %3457 = vmatprep.mubr.msk.f32.mxu1 %vm3861_vm1, %v3860_v0 }
 0x3d4   :  { %3643 = vmatpush3.bf16.msra.mxu0 %v3963_v12  ;;  %3471 = vmatprep.subr.mxu1 %v3860_v0 }
 0x3d5   :  { %3481 = vmatprep.subr.mxu0 %v3860_v0 }
 0x3d6   :  { %3458 = vmatmul.mubr.msk.f32.vlgmr.msra.gmra.mrb[16].mxu1 %vm51_vm2, %v831_v28 }
 0x3d7   :  { %3472 = vmatpush3.msra.mxu1 %v3907_v1  ;;  %3473 = vmatprep.mubr.msk.f32.mxu1 %vm3861_vm1, %v3860_v0 }
 0x3d8   :  { %3476 = vmatprep.subr.mxu1 %v3860_v0 }
 0x4a1   :  { %v906_v31 = vpop.f32.mrb[12].mxu1  ;;  %v1052_v32 = vpop.f32.mrb[8].mxu0 }
 0x4a2   :  { %v910_v33 = vadd.f32 %v906_v31, %v836_v30  ;;  %v3444_v34 = vpop.f32.mrb[13].mxu1  ;;  %v3454_v35 = vpop.f32.mrb[9].mxu0  ;;  %v1056_v47 = vadd.f32 %v1052_v32, %v985_v45 }
 0x4a4   :  { %v3230_v37 = vmul.f32 -1.442695, %v910_v33 }
 0x4a5   :  { %v979_v38 = vpop.f32.mrb[14].mxu1 }
 0x4a6   :  { %3713 = vpow2.f32 %v3230_v37  ;;  %v983_v39 = vadd.f32 %v979_v38, %v912_v36  ;;  %v3449_v40 = vpop.f32.mrb[15].mxu1 }
 0x4a8   :  { %v3231_v41 = vmul.f32 -1.442695, %v983_v39 }
 0x4a9   :  { %v1125_v43 = vpop.f32.mrb[16].mxu1 }
 0x4aa   :  { %3715 = vpow2.f32 %v3231_v41  ;;  %v3459_v44 = vpop.f32.mrb[17].mxu1  ;;  %v1129_v46 = vadd.f32 %v1125_v43, %v1058_v42 }
 0x4ab   :  { %3717 = vtanh.f32 %v1056_v47 }
 0x4ac   :  { %v3232_v49 = vmul.f32 -1.442695, %v1129_v46  ;;  %v1620_v46 = vld [vmem:[#allocation4 + $0x8] sm:$0x3] }
 0x4b0   :  { %v3714_v48 = vpop.eup %3713 }
 0x4b1   :  { %v1133_v50 = vadd.f32 1.0, %v3714_v48 }
 0x4b3   :  { %3719 = vrcp.f32 %v1133_v50 }
 0x4b4   :  { %v3716_v51 = vpop.eup %3715  ;;  %3721 = vpow2.f32 %v3232_v49 }
 0x4b5   :  { %v1139_v52 = vadd.f32 1.0, %v3716_v51  ;;  %v3718_v53 = vpop.eup %3717 }
 0x4b7   :  { %3723 = vrcp.f32 %v1139_v52  ;;  %v1696_v52 = vld [vmem:[#allocation4 + $0x18] sm:$0x3] }
 0x4bd   :  { %v3720_v54 = vpop.eup %3719 }
 0x4be   :  { %v3722_v55 = vpop.eup %3721  ;;  %v1150_v56 = vmul.f32 %v3720_v54, %v3718_v53 }
 0x4bf   :  { %v1146_v58 = vadd.f32 1.0, %v3722_v55 }
 0x4c1   :  { %v3724_v57 = vpop.eup %3723  ;;  %3725 = vrcp.f32 %v1146_v58  ;;  %v1842_v58 = vld [vmem:[#allocation4 + $0x38] sm:$0x3] }
 0x4c2   :  { %v1149_v59 = vmul.f32 %v3724_v57, %v3999_v24 }
 0x4c4   :  { %v4030_v60 = vadd.f32 %v1150_v56, %v1149_v59 }
 0x4c6   :  { %3727 = vtanh.f32 %v4030_v60 }
 0x4cb   :  { %v3726_v61 = vpop.eup %3725 }
 0x4d0   :  { %v3728_v62 = vpop.eup %3727 }
 0x4d1   :  { %v1153_v63 = vmul.f32 %v3728_v62, %v3726_v61  ;;  %v1769_v61 = vld [vmem:[#allocation4 + $0x28] sm:$0x3] }
 0x4d3   :  { %3469 = vmatmul.mubr.msk.f32.vlgmr.msra.gmra.mrb[10].mxu0 %vm369_vm4, %v1153_v63 }
 0x4d4   :  { %3482 = vmatpush3.msra.mxu0 %v3917_v3  ;;  %3483 = vmatprep.mubr.msk.f32.mxu0 %vm3861_vm1, %v3860_v0 }
 0x4d5   :  { %3644 = vmatprep.subr.bf16.mxu0 %v3862_v9 }
 0x5a6   :  { %v1223_v4 = vpop.f32.mrb[10].mxu0 }
 0x5a7   :  { %v3470_v6 = vpop.f32.mrb[11].mxu0  ;;  %3474 = vmatmul.mubr.msk.f32.vlgmr.msra.gmra.mrb[18].mxu1 %vm51_vm2, %v1223_v4  ;;  %3484 = vmatmul.mubr.msk.f32.vlgmr.msra.gmra.mrb[12].mxu0 %vm51_vm2, %v1223_v4 }
 0x5a8   :  { %3477 = vmatpush3.msra.mxu1 %v3912_v2  ;;  %3478 = vmatprep.mubr.msk.f32.mxu1 %vm3861_vm1, %v3860_v0 }
 0x5a9   :  { %3486 = vmatprep.subr.mxu1 %v3860_v0  ;;  %3646 = vmatpush3.bf16.msra.mxu0 %v3957_v10 }
 0x5aa   :  { %3647 = vmatprep.subr.bf16.mxu0 %v3862_v9  ;;  %3499 = vmatprep.mubr.msk.f32.mxu0 %vm3861_vm1, %v3860_v0 }
 0x5ab   :  { %3479 = vmatmul.mubr.msk.f32.vlgmr.msra.gmra.mrb[20].mxu1 %vm51_vm2, %v1223_v4 }
 0x5ac   :  { %3487 = vmatpush3.msra.mxu1 %v3931_v5  ;;  %3488 = vmatprep.mubr.msk.f32.mxu1 %vm3861_vm1, %v3860_v0 }
 0x5ad   :  { %3649 = vmatpush3.bf16.msra.mxu0 %v3963_v12  ;;  %3502 = vmatprep.subr.mxu1 %v3860_v0 }
 0x5ae   :  { %3512 = vmatprep.subr.mxu0 %v3860_v0 }
 0x5af   :  { %3489 = vmatmul.mubr.msk.f32.vlgmr.msra.gmra.mrb[22].mxu1 %vm51_vm2, %v1223_v4 }
 0x5b0   :  { %3503 = vmatpush3.msra.mxu1 %v3907_v1  ;;  %3504 = vmatprep.mubr.msk.f32.mxu1 %vm3861_vm1, %v3860_v0 }
 0x5b1   :  { %3507 = vmatprep.subr.mxu1 %v3860_v0 }
 0x67a   :  { %v1298_v8 = vpop.f32.mrb[18].mxu1  ;;  %v1444_v11 = vpop.f32.mrb[12].mxu0 }
 0x67b   :  { %v1302_v13 = vadd.f32 %v1298_v8, %v1228_v7  ;;  %v3475_v14 = vpop.f32.mrb[19].mxu1  ;;  %v3485_v15 = vpop.f32.mrb[13].mxu0  ;;  %v1448_v27 = vadd.f32 %v1444_v11, %v1377_v25 }
 0x67d   :  { %v3238_v17 = vmul.f32 -1.442695, %v1302_v13 }
 0x67e   :  { %v1371_v18 = vpop.f32.mrb[20].mxu1 }
 0x67f   :  { %3729 = vpow2.f32 %v3238_v17  ;;  %v1375_v19 = vadd.f32 %v1371_v18, %v1304_v16  ;;  %v3480_v20 = vpop.f32.mrb[21].mxu1 }
 0x681   :  { %v3239_v21 = vmul.f32 -1.442695, %v1375_v19 }
 0x682   :  { %v1517_v23 = vpop.f32.mrb[22].mxu1 }
 0x683   :  { %3731 = vpow2.f32 %v3239_v21  ;;  %v3490_v24 = vpop.f32.mrb[23].mxu1  ;;  %v1521_v26 = vadd.f32 %v1517_v23, %v1450_v22 }
 0x684   :  { %3733 = vtanh.f32 %v1448_v27 }
 0x685   :  { %v3240_v29 = vmul.f32 -1.442695, %v1521_v26  ;;  %v2012_v26 = vld [vmem:[#allocation4 + $0xa] sm:$0x3] }
 0x689   :  { %v3730_v28 = vpop.eup %3729 }
 0x68a   :  { %v1525_v30 = vadd.f32 1.0, %v3730_v28 }
 0x68c   :  { %3735 = vrcp.f32 %v1525_v30 }
 0x68d   :  { %v3732_v31 = vpop.eup %3731  ;;  %3737 = vpow2.f32 %v3240_v29 }
 0x68e   :  { %v1531_v32 = vadd.f32 1.0, %v3732_v31  ;;  %v3734_v33 = vpop.eup %3733 }
 0x690   :  { %3739 = vrcp.f32 %v1531_v32  ;;  %v2088_v32 = vld [vmem:[#allocation4 + $0x1a] sm:$0x3] }
 0x696   :  { %v3736_v34 = vpop.eup %3735 }
 0x697   :  { %v3738_v35 = vpop.eup %3737  ;;  %v1542_v36 = vmul.f32 %v3736_v34, %v3734_v33 }
 0x698   :  { %v1538_v38 = vadd.f32 1.0, %v3738_v35 }
 0x69a   :  { %v3740_v37 = vpop.eup %3739  ;;  %3741 = vrcp.f32 %v1538_v38  ;;  %v2234_v38 = vld [vmem:[#allocation4 + $0x3a] sm:$0x3] }
 0x69b   :  { %v1541_v39 = vmul.f32 %v3740_v37, %v4030_v60 }
 0x69d   :  { %v4061_v40 = vadd.f32 %v1542_v36, %v1541_v39 }
 0x69f   :  { %3743 = vtanh.f32 %v4061_v40 }
 0x6a4   :  { %v3742_v41 = vpop.eup %3741 }
 0x6a9   :  { %v3744_v42 = vpop.eup %3743 }
 0x6aa   :  { %v1545_v43 = vmul.f32 %v3744_v42, %v3742_v41  ;;  %v2161_v41 = vld [vmem:[#allocation4 + $0x2a] sm:$0x3] }
 0x6ac   :  { %3500 = vmatmul.mubr.msk.f32.vlgmr.msra.gmra.mrb[14].mxu0 %vm369_vm4, %v1545_v43 }
 0x6ad   :  { %3513 = vmatpush3.msra.mxu0 %v3917_v3  ;;  %3514 = vmatprep.mubr.msk.f32.mxu0 %vm3861_vm1, %v3860_v0 }
 0x6ae   :  { %3650 = vmatprep.subr.bf16.mxu0 %v3862_v9 }
 0x77f   :  { %v1615_v44 = vpop.f32.mrb[14].mxu0 }
 0x780   :  { %v3501_v45 = vpop.f32.mrb[15].mxu0  ;;  %3505 = vmatmul.mubr.msk.f32.vlgmr.msra.gmra.mrb[24].mxu1 %vm51_vm2, %v1615_v44  ;;  %3515 = vmatmul.mubr.msk.f32.vlgmr.msra.gmra.mrb[16].mxu0 %vm51_vm2, %v1615_v44 }
 0x781   :  { %3508 = vmatpush3.msra.mxu1 %v3912_v2  ;;  %3509 = vmatprep.mubr.msk.f32.mxu1 %vm3861_vm1, %v3860_v0 }
 0x782   :  { %3517 = vmatprep.subr.mxu1 %v3860_v0  ;;  %3652 = vmatpush3.bf16.msra.mxu0 %v3957_v10 }
 0x783   :  { %3653 = vmatprep.subr.bf16.mxu0 %v3862_v9  ;;  %3530 = vmatprep.mubr.msk.f32.mxu0 %vm3861_vm1, %v3860_v0 }
 0x784   :  { %3510 = vmatmul.mubr.msk.f32.vlgmr.msra.gmra.mrb[26].mxu1 %vm51_vm2, %v1615_v44 }
 0x785   :  { %3518 = vmatpush3.msra.mxu1 %v3931_v5  ;;  %3519 = vmatprep.mubr.msk.f32.mxu1 %vm3861_vm1, %v3860_v0 }
 0x786   :  { %3655 = vmatpush3.bf16.msra.mxu0 %v3963_v12  ;;  %3533 = vmatprep.subr.mxu1 %v3860_v0 }
 0x787   :  { %3543 = vmatprep.subr.mxu0 %v3860_v0 }
 0x788   :  { %3520 = vmatmul.mubr.msk.f32.vlgmr.msra.gmra.mrb[28].mxu1 %vm51_vm2, %v1615_v44 }
 0x789   :  { %3534 = vmatpush3.msra.mxu1 %v3907_v1  ;;  %3535 = vmatprep.mubr.msk.f32.mxu1 %vm3861_vm1, %v3860_v0 }
 0x78a   :  { %3538 = vmatprep.subr.mxu1 %v3860_v0 }
 0x853   :  { %v1690_v47 = vpop.f32.mrb[24].mxu1  ;;  %v1836_v48 = vpop.f32.mrb[16].mxu0 }
 0x854   :  { %v1694_v49 = vadd.f32 %v1690_v47, %v1620_v46  ;;  %v3506_v50 = vpop.f32.mrb[25].mxu1  ;;  %v3516_v51 = vpop.f32.mrb[17].mxu0  ;;  %v1840_v63 = vadd.f32 %v1836_v48, %v1769_v61 }
 0x856   :  { %v3246_v53 = vmul.f32 -1.442695, %v1694_v49 }
 0x857   :  { %v1763_v54 = vpop.f32.mrb[26].mxu1 }
 0x858   :  { %3745 = vpow2.f32 %v3246_v53  ;;  %v1767_v55 = vadd.f32 %v1763_v54, %v1696_v52  ;;  %v3511_v56 = vpop.f32.mrb[27].mxu1 }
 0x85a   :  { %v3247_v57 = vmul.f32 -1.442695, %v1767_v55 }
 0x85b   :  { %v1909_v59 = vpop.f32.mrb[28].mxu1 }
 0x85c   :  { %3747 = vpow2.f32 %v3247_v57  ;;  %v3521_v60 = vpop.f32.mrb[29].mxu1  ;;  %v1913_v62 = vadd.f32 %v1909_v59, %v1842_v58 }
 0x85d   :  { %3749 = vtanh.f32 %v1840_v63 }
 0x85e   :  { %v3248_v6 = vmul.f32 -1.442695, %v1913_v62  ;;  %v2404_v62 = vld [vmem:[#allocation4 + $0xc] sm:$0x3] }
 0x862   :  { %v3746_v4 = vpop.eup %3745 }
 0x863   :  { %v1917_v7 = vadd.f32 1.0, %v3746_v4 }
 0x865   :  { %3751 = vrcp.f32 %v1917_v7 }
 0x866   :  { %v3748_v8 = vpop.eup %3747  ;;  %3753 = vpow2.f32 %v3248_v6 }
 0x867   :  { %v1923_v11 = vadd.f32 1.0, %v3748_v8  ;;  %v3750_v13 = vpop.eup %3749 }
 0x869   :  { %3755 = vrcp.f32 %v1923_v11  ;;  %v2480_v11 = vld [vmem:[#allocation4 + $0x1c] sm:$0x3] }
 0x86f   :  { %v3752_v14 = vpop.eup %3751 }
 0x870   :  { %v3754_v15 = vpop.eup %3753  ;;  %v1934_v16 = vmul.f32 %v3752_v14, %v3750_v13 }
 0x871   :  { %v1930_v18 = vadd.f32 1.0, %v3754_v15 }
 0x873   :  { %v3756_v17 = vpop.eup %3755  ;;  %3757 = vrcp.f32 %v1930_v18  ;;  %v2626_v18 = vld [vmem:[#allocation4 + $0x3c] sm:$0x3] }
 0x874   :  { %v1933_v19 = vmul.f32 %v3756_v17, %v4061_v40 }
 0x876   :  { %v4092_v20 = vadd.f32 %v1934_v16, %v1933_v19 }
 0x878   :  { %3759 = vtanh.f32 %v4092_v20 }
 0x87d   :  { %v3758_v21 = vpop.eup %3757 }
 0x882   :  { %v3760_v22 = vpop.eup %3759 }
 0x883   :  { %v1937_v23 = vmul.f32 %v3760_v22, %v3758_v21 }
 0x885   :  { %3531 = vmatmul.mubr.msk.f32.vlgmr.msra.gmra.mrb[18].mxu0 %vm369_vm4, %v1937_v23 }
 0x886   :  { %3544 = vmatpush3.msra.mxu0 %v3917_v3  ;;  %3545 = vmatprep.mubr.msk.f32.mxu0 %vm3861_vm1, %v3860_v0 }
 0x887   :  { %3656 = vmatprep.subr.bf16.mxu0 %v3862_v9 }
 0x958   :  { %v2007_v24 = vpop.f32.mrb[18].mxu0 }
 0x959   :  { %v3532_v25 = vpop.f32.mrb[19].mxu0  ;;  %3536 = vmatmul.mubr.msk.f32.vlgmr.msra.gmra.mrb[30].mxu1 %vm51_vm2, %v2007_v24  ;;  %3546 = vmatmul.mubr.msk.f32.vlgmr.msra.gmra.mrb[20].mxu0 %vm51_vm2, %v2007_v24 }
 0x95a   :  { %3539 = vmatpush3.msra.mxu1 %v3912_v2  ;;  %3540 = vmatprep.mubr.msk.f32.mxu1 %vm3861_vm1, %v3860_v0 }
 0x95b   :  { %3548 = vmatprep.subr.mxu1 %v3860_v0  ;;  %3658 = vmatpush3.bf16.msra.mxu0 %v3957_v10 }
 0x95c   :  { %3659 = vmatprep.subr.bf16.mxu0 %v3862_v9  ;;  %3561 = vmatprep.mubr.msk.f32.mxu0 %vm3861_vm1, %v3860_v0 }
 0x95d   :  { %3541 = vmatmul.mubr.msk.f32.vlgmr.msra.gmra.mrb[32].mxu1 %vm51_vm2, %v2007_v24 }
 0x95e   :  { %3549 = vmatpush3.msra.mxu1 %v3931_v5  ;;  %3550 = vmatprep.mubr.msk.f32.mxu1 %vm3861_vm1, %v3860_v0 }
 0x95f   :  { %3661 = vmatpush3.bf16.msra.mxu0 %v3963_v12  ;;  %3564 = vmatprep.subr.mxu1 %v3860_v0 }
 0x960   :  { %3574 = vmatprep.subr.mxu0 %v3860_v0 }
 0x961   :  { %3551 = vmatmul.mubr.msk.f32.vlgmr.msra.gmra.mrb[34].mxu1 %vm51_vm2, %v2007_v24 }
 0x962   :  { %3565 = vmatpush3.msra.mxu1 %v3907_v1  ;;  %3566 = vmatprep.mubr.msk.f32.mxu1 %vm3861_vm1, %v3860_v0 }
 0x963   :  { %3569 = vmatprep.subr.mxu1 %v3860_v0 }
 0xa2c   :  { %v2082_v27 = vpop.f32.mrb[30].mxu1  ;;  %v2228_v28 = vpop.f32.mrb[20].mxu0 }
 0xa2d   :  { %v2086_v29 = vadd.f32 %v2082_v27, %v2012_v26  ;;  %v3537_v30 = vpop.f32.mrb[31].mxu1  ;;  %v3547_v31 = vpop.f32.mrb[21].mxu0  ;;  %v2232_v43 = vadd.f32 %v2228_v28, %v2161_v41 }
 0xa2f   :  { %v3254_v33 = vmul.f32 -1.442695, %v2086_v29 }
 0xa30   :  { %v2155_v34 = vpop.f32.mrb[32].mxu1 }
 0xa31   :  { %3761 = vpow2.f32 %v3254_v33  ;;  %v2159_v35 = vadd.f32 %v2155_v34, %v2088_v32  ;;  %v3542_v36 = vpop.f32.mrb[33].mxu1 }
 0xa33   :  { %v3255_v37 = vmul.f32 -1.442695, %v2159_v35 }
 0xa34   :  { %v2301_v39 = vpop.f32.mrb[34].mxu1 }
 0xa35   :  { %3763 = vpow2.f32 %v3255_v37  ;;  %v3552_v40 = vpop.f32.mrb[35].mxu1  ;;  %v2305_v42 = vadd.f32 %v2301_v39, %v2234_v38 }
 0xa36   :  { %3765 = vtanh.f32 %v2232_v43  ;;  %v2872_v43 = vld [vmem:[#allocation4 + $0x1e] sm:$0x3] }
 0xa37   :  { %v3256_v45 = vmul.f32 -1.442695, %v2305_v42 }
 0xa3b   :  { %v3762_v44 = vpop.eup %3761 }
 0xa3c   :  { %v2309_v46 = vadd.f32 1.0, %v3762_v44 }
 0xa3e   :  { %3767 = vrcp.f32 %v2309_v46 }
 0xa3f   :  { %v3764_v47 = vpop.eup %3763  ;;  %3769 = vpow2.f32 %v3256_v45 }
 0xa40   :  { %v2315_v48 = vadd.f32 1.0, %v3764_v47  ;;  %v3766_v49 = vpop.eup %3765 }
 0xa42   :  { %3771 = vrcp.f32 %v2315_v48  ;;  %v3018_v48 = vld [vmem:[#allocation4 + $0x3e] sm:$0x3] }
 0xa48   :  { %v3768_v50 = vpop.eup %3767 }
 0xa49   :  { %v3770_v51 = vpop.eup %3769  ;;  %v2326_v52 = vmul.f32 %v3768_v50, %v3766_v49 }
 0xa4a   :  { %v2322_v54 = vadd.f32 1.0, %v3770_v51 }
 0xa4c   :  { %v3772_v53 = vpop.eup %3771  ;;  %3773 = vrcp.f32 %v2322_v54 }
 0xa4d   :  { %v2325_v55 = vmul.f32 %v3772_v53, %v4092_v20  ;;  %v2553_v20 = vld [vmem:[#allocation4 + $0x2c] sm:$0x3] }
 0xa4f   :  { %v4123_v56 = vadd.f32 %v2326_v52, %v2325_v55 }
 0xa51   :  { %3775 = vtanh.f32 %v4123_v56 }
 0xa56   :  { %v3774_v57 = vpop.eup %3773 }
 0xa5b   :  { %v3776_v58 = vpop.eup %3775 }
 0xa5c   :  { %v2329_v59 = vmul.f32 %v3776_v58, %v3774_v57 }
 0xa5e   :  { %3562 = vmatmul.mubr.msk.f32.vlgmr.msra.gmra.mrb[22].mxu0 %vm369_vm4, %v2329_v59 }
 0xa5f   :  { %3575 = vmatpush3.msra.mxu0 %v3917_v3  ;;  %3576 = vmatprep.mubr.msk.f32.mxu0 %vm3861_vm1, %v3860_v0 }
 0xa60   :  { %3662 = vmatprep.subr.bf16.mxu0 %v3862_v9 }
 0xb31   :  { %v2399_v60 = vpop.f32.mrb[22].mxu0 }
 0xb32   :  { %v3563_v61 = vpop.f32.mrb[23].mxu0  ;;  %3567 = vmatmul.mubr.msk.f32.vlgmr.msra.gmra.mrb[36].mxu1 %vm51_vm2, %v2399_v60  ;;  %3577 = vmatmul.mubr.msk.f32.vlgmr.msra.gmra.mrb[24].mxu0 %vm51_vm2, %v2399_v60 }
 0xb33   :  { %3570 = vmatpush3.msra.mxu1 %v3912_v2  ;;  %3571 = vmatprep.mubr.msk.f32.mxu1 %vm3861_vm1, %v3860_v0 }
 0xb34   :  { %3579 = vmatprep.subr.mxu1 %v3860_v0  ;;  %3664 = vmatpush3.bf16.msra.mxu0 %v3957_v10 }
 0xb35   :  { %3665 = vmatprep.subr.bf16.mxu0 %v3862_v9  ;;  %3592 = vmatprep.mubr.msk.f32.mxu0 %vm3861_vm1, %v3860_v0 }
 0xb36   :  { %3572 = vmatmul.mubr.msk.f32.vlgmr.msra.gmra.mrb[38].mxu1 %vm51_vm2, %v2399_v60 }
 0xb37   :  { %3580 = vmatpush3.msra.mxu1 %v3931_v5  ;;  %3581 = vmatprep.mubr.msk.f32.mxu1 %vm3861_vm1, %v3860_v0 }
 0xb38   :  { %3667 = vmatpush3.bf16.msra.mxu0 %v3963_v12  ;;  %3595 = vmatprep.subr.mxu1 %v3860_v0 }
 0xb39   :  { %3605 = vmatprep.subr.mxu0 %v3860_v0 }
 0xb3a   :  { %3582 = vmatmul.mubr.msk.f32.vlgmr.msra.gmra.mrb[40].mxu1 %vm51_vm2, %v2399_v60 }
 0xb3b   :  { %3596 = vmatpush3.msra.mxu1 %v3907_v1  ;;  %3597 = vmatprep.mubr.msk.f32.mxu1 %vm3861_vm1, %v3860_v0 }
 0xb3c   :  { %3600 = vmatprep.subr.mxu1 %v3860_v0 }
 0xc05   :  { %v2474_v63 = vpop.f32.mrb[36].mxu1  ;;  %v2620_v4 = vpop.f32.mrb[24].mxu0 }
 0xc06   :  { %v2478_v6 = vadd.f32 %v2474_v63, %v2404_v62  ;;  %v3568_v7 = vpop.f32.mrb[37].mxu1  ;;  %v3578_v8 = vpop.f32.mrb[25].mxu0  ;;  %v2624_v22 = vadd.f32 %v2620_v4, %v2553_v20 }
 0xc08   :  { %v3262_v13 = vmul.f32 -1.442695, %v2478_v6 }
 0xc09   :  { %v2547_v14 = vpop.f32.mrb[38].mxu1 }
 0xc0a   :  { %3777 = vpow2.f32 %v3262_v13  ;;  %v2551_v15 = vadd.f32 %v2547_v14, %v2480_v11  ;;  %v3573_v16 = vpop.f32.mrb[39].mxu1 }
 0xc0c   :  { %v3263_v17 = vmul.f32 -1.442695, %v2551_v15 }
 0xc0d   :  { %v2693_v1 = vpop.f32.mrb[40].mxu1 }
 0xc0e   :  { %3779 = vpow2.f32 %v3263_v17  ;;  %v3583_v19 = vpop.f32.mrb[41].mxu1  ;;  %v2697_v21 = vadd.f32 %v2693_v1, %v2626_v18 }
 0xc0f   :  { %3781 = vtanh.f32 %v2624_v22 }
 0xc10   :  { %v3264_v24 = vmul.f32 -1.442695, %v2697_v21 }
 0xc14   :  { %v3778_v23 = vpop.eup %3777 }
 0xc15   :  { %v2701_v25 = vadd.f32 1.0, %v3778_v23 }
 0xc17   :  { %3783 = vrcp.f32 %v2701_v25 }
 0xc18   :  { %v3780_v26 = vpop.eup %3779  ;;  %3785 = vpow2.f32 %v3264_v24 }
 0xc19   :  { %v2707_v27 = vadd.f32 1.0, %v3780_v26  ;;  %v3782_v28 = vpop.eup %3781 }
 0xc1b   :  { %3787 = vrcp.f32 %v2707_v27 }
 0xc21   :  { %v3784_v29 = vpop.eup %3783 }
 0xc22   :  { %v3786_v30 = vpop.eup %3785  ;;  %v2718_v31 = vmul.f32 %v3784_v29, %v3782_v28 }
 0xc23   :  { %v2714_v33 = vadd.f32 1.0, %v3786_v30 }
 0xc25   :  { %v3788_v32 = vpop.eup %3787  ;;  %3789 = vrcp.f32 %v2714_v33 }
 0xc26   :  { %v2717_v34 = vmul.f32 %v3788_v32, %v4123_v56 }
 0xc28   :  { %v2719_v35 = vadd.f32 %v2718_v31, %v2717_v34 }
 0xc2a   :  { %3791 = vtanh.f32 %v2719_v35 }
 0xc2f   :  { %v3790_v36 = vpop.eup %3789 }
 0xc34   :  { %v3792_v37 = vpop.eup %3791 }
 0xc35   :  { %v2721_v38 = vmul.f32 %v3792_v37, %v3790_v36 }
 0xc37   :  { %3593 = vmatmul.mubr.msk.f32.vlgmr.msra.gmra.mrb[26].mxu0 %vm369_vm4, %v2721_v38 }
 0xc38   :  { %3606 = vmatpush3.msra.mxu0 %v3917_v3  ;;  %3607 = vmatprep.mubr.msk.f32.mxu0 %vm3861_vm1, %v3860_v0 }
 0xc39   :  { %3668 = vmatprep.subr.bf16.mxu0 %v3862_v9 }
 0xd0a   :  { %v2791_v39 = vpop.f32.mrb[26].mxu0 }
 0xd0b   :  { %v3594_v40 = vpop.f32.mrb[27].mxu0  ;;  %3598 = vmatmul.mubr.msk.f32.vlgmr.msra.gmra.mrb[42].mxu1 %vm51_vm2, %v2791_v39  ;;  %3608 = vmatmul.mubr.msk.f32.vlgmr.msra.gmra.mrb[28].mxu0 %vm51_vm2, %v2791_v39 }
 0xd0c   :  { %3601 = vmatpush3.msra.mxu1 %v3912_v2  ;;  %3602 = vmatprep.mubr.msk.f32.mxu1 %vm3861_vm1, %v3860_v0  ;;  %v2796_v2 = vld [vmem:[#allocation4 + $0xe] sm:$0x3] }
 0xd0d   :  { %3610 = vmatprep.subr.mxu1 %v3860_v0  ;;  %3670 = vmatpush3.bf16.msra.mxu0 %v3957_v10 }
 0xd0e   :  { %3671 = vmatprep.subr.bf16.mxu0 %v3862_v9  ;;  %3623 = vmatprep.mubr.msk.f32.mxu0 %vm3861_vm1, %v3860_v0 }
 0xd0f   :  { %3603 = vmatmul.mubr.msk.f32.vlgmr.msra.gmra.mrb[44].mxu1 %vm51_vm2, %v2791_v39 }
 0xd10   :  { %3611 = vmatpush3.msra.mxu1 %v3931_v5  ;;  %3612 = vmatprep.mubr.msk.f32.mxu1 %vm3861_vm1, %v3860_v0 }
 0xd11   :  { %3673 = vmatpush3.bf16.msra.mxu0 %v3963_v12  ;;  %v2945_v12 = vld [vmem:[#allocation4 + $0x2e] sm:$0x3] }
 0xd13   :  { %3613 = vmatmul.mubr.msk.f32.vlgmr.msra.gmra.mrb[46].mxu1 %vm51_vm2, %v2791_v39 }
 0xdde   :  { %v2866_v3 = vpop.f32.mrb[42].mxu1  ;;  %v3012_v41 = vpop.f32.mrb[28].mxu0 }
 0xddf   :  { %v2870_v10 = vadd.f32 %v2866_v3, %v2796_v2  ;;  %v3599_v42 = vpop.f32.mrb[43].mxu1  ;;  %v3609_v9 = vpop.f32.mrb[29].mxu0  ;;  %v3016_v51 = vadd.f32 %v3012_v41, %v2945_v12 }
 0xde1   :  { %v3270_v44 = vmul.f32 -1.442695, %v2870_v10 }
 0xde2   :  { %v2939_v45 = vpop.f32.mrb[44].mxu1 }
 0xde3   :  { %3793 = vpow2.f32 %v3270_v44  ;;  %v2943_v46 = vadd.f32 %v2939_v45, %v2872_v43  ;;  %v3604_v47 = vpop.f32.mrb[45].mxu1 }
 0xde5   :  { %v3271_v5 = vmul.f32 -1.442695, %v2943_v46 }
 0xde6   :  { %v3085_v49 = vpop.f32.mrb[46].mxu1 }
 0xde7   :  { %3795 = vpow2.f32 %v3271_v5  ;;  %v3614_v0 = vpop.f32.mrb[47].mxu1  ;;  %v3089_v50 = vadd.f32 %v3085_v49, %v3018_v48 }
 0xde8   :  { %3797 = vtanh.f32 %v3016_v51 }
 0xde9   :  { %v3272_v53 = vmul.f32 -1.442695, %v3089_v50 }
 0xded   :  { %v3794_v52 = vpop.eup %3793 }
 0xdee   :  { %v3093_v54 = vadd.f32 1.0, %v3794_v52 }
 0xdf0   :  { %3799 = vrcp.f32 %v3093_v54 }
 0xdf1   :  { %v3796_v55 = vpop.eup %3795  ;;  %3801 = vpow2.f32 %v3272_v53 }
 0xdf2   :  { %v3099_v56 = vadd.f32 1.0, %v3796_v55  ;;  %v3798_v57 = vpop.eup %3797 }
 0xdf4   :  { %3803 = vrcp.f32 %v3099_v56 }
 0xdfa   :  { %v3800_v58 = vpop.eup %3799 }
 0xdfb   :  { %v3802_v59 = vpop.eup %3801  ;;  %v3110_v60 = vmul.f32 %v3800_v58, %v3798_v57 }
 0xdfc   :  { %v3106_v62 = vadd.f32 1.0, %v3802_v59 }
 0xdfe   :  { %v3804_v61 = vpop.eup %3803  ;;  %3805 = vrcp.f32 %v3106_v62 }
 0xdff   :  { %v3109_v63 = vmul.f32 %v3804_v61, %v2719_v35 }
 0xe01   :  { %v3111_v4 = vadd.f32 %v3110_v60, %v3109_v63 }
 0xe03   :  { %3807 = vtanh.f32 %v3111_v4  ;;  %3191 = vst.msk [vmem:[#allocation3] sm:$0x3] %vm35_vm3, %v3111_v4 }
 0xe08   :  { %v3806_v6 = vpop.eup %3805 }
 0xe0d   :  { %v3808_v7 = vpop.eup %3807 }
 0xe0e   :  { %v3113_v8 = vmul.f32 %v3808_v7, %v3806_v6 }
 0xe10   :  { %3624 = vmatmul.mubr.msk.f32.vlgmr.msra.gmra.mrb[30].mxu0 %vm369_vm4, %v3113_v8 }
 0xee3   :  { %v3183_v11 = vpop.f32.mrb[30].mxu0 }
 0xee4   :  { %3189 = vst.msk [vmem:[#allocation2] sm:$0x3] %vm33_vm0, %v3183_v11  ;;  %3188 = vst.msk [vmem:[#allocation7] sm:$0x3] %vm33_vm0, %v3183_v11  ;;  %v3625_v13 = vpop.f32.mrb[31].mxu0 }
 0xee5   :  { %3842 = shalt.err (!%p3839_p12)
}
 0xee6   :  { %s3843_s17 = scalar_lea.hbm %s4194_s3, 32 }
 0xee7   :  { %p3844_p13 = scmp.ne.s32.totalorder %s4194_s3, %s3843_s17  ;;  %p3847_p0 = scmp.lt.u32.totalorder %s3843_s17, %s4194_s3 }
 0xee9   :  { %p3849_p1 = pnand %p3847_p0, %p3844_p13 }
 0xeeb   :  { %3852 = shalt.err (!%p3849_p1)
}
 0xeec   :  { %3201 = dma.vmem_to_hbm [thread:$0]  %s3199_s13, 32, %s4194_s3, [#allocation6]  }
 0xeed   :  { %3855 = dma.done.wait [#allocation6], 32  }
 0xeee   :  { %3856 = vsyncadd [#allocation6], 4294967264 }
 0xeef   :  { %3205 = vsyncpa [#allocation5], 1 }
 0xef0   :  { %3206 = vsyncpa [#allocation6], 1 }

</bundles_post_ra>
